<compile_context>
chip_gen: v7x
topology: tpu7x:2x2x1
jax: 0.10.0
libtpu: 0.0.40
codegen_flags: <defaults>
</compile_context>

<pallas_src>
import math

import numpy as np
import jax
import jax.numpy as jnp
from jax import lax
from jax.experimental import pallas as pl
from jax.experimental.pallas import tpu as pltpu

_INV_2PI = float(0.5 / math.pi)


def _collision_kernel(pts_ref, mc_ref, const_ref,
                      gx_ref, gy_ref, pdf_ref, coll_ref):
    # pts_ref   : (TB, T, 4)     lanes = [px, py, tx, ty]
    # mc_ref    : (TB, A, T, 5)  lanes = [mx, my, cxx, cxy, cyy]
    # const_ref : (3, 1, N2)     rows  = [lu, lv, w2d]   (spatial GL nodes/weights)
    # gx_ref/gy_ref : (TB, T, N2)   world-frame quadrature points
    # pdf_ref   : (TB, A, T, N2)    obstacle pdf values at those points
    # coll_ref  : (TB, T, 1)        per-time-node collision probability
    consts = const_ref[...]
    lu = consts[0:1, :, :]                      # (1, 1, N2) longitudinal local coords
    lv = consts[1:2, :, :]                      # (1, 1, N2) lateral local coords
    w2d = consts[2:3, :, :][None]               # (1, 1, 1, N2) 2-D quadrature weights

    pts = pts_ref[...]                          # (TB, T, 4)
    px = pts[:, :, 0:1]                         # (TB, T, 1)
    py = pts[:, :, 1:2]
    tx = pts[:, :, 2:3]
    ty = pts[:, :, 3:4]

    # normal = tangent @ [[0,1],[-1,0]] = (-ty, tx);  world pt = p + R @ [u, v]
    gx = px + tx * lu - ty * lv                 # (TB, T, N2)
    gy = py + ty * lu + tx * lv
    gx_ref[...] = gx
    gy_ref[...] = gy

    gxb = gx[:, None, :, :]                     # (TB, 1, T, N2)  (hoisted out of the A-loop)
    gyb = gy[:, None, :, :]

    A = mc_ref.shape[1]
    no_coll = None
    for a in range(A):                          # A is small & static -> unrolled
        mca = mc_ref[:, a:a + 1]                # (TB, 1, T, 5)
        mx = mca[..., 0:1]                      # (TB, 1, T, 1)
        my = mca[..., 1:2]
        cxx = mca[..., 2:3]
        cxy = mca[..., 3:4]
        cyy = mca[..., 4:5]

        det = cxx * cyy - cxy * cxy             # (TB, 1, T, 1)
        rs = lax.rsqrt(det)                     # single EUP transcendental
        inv_det = rs * rs                       # 1/det
        norm = _INV_2PI * rs                    # 1/(2*pi*sqrt(det))

        ixx = cyy * inv_det
        ixy = -cxy * inv_det
        iyy = cxx * inv_det

        dx = gxb - mx                           # (TB, 1, T, N2)
        dy = gyb - my
        quad = ixx * dx * dx + 2.0 * ixy * dx * dy + iyy * dy * dy
        pdf_a = norm * jnp.exp(-0.5 * quad)     # (TB, 1, T, N2)
        pdf_ref[:, a:a + 1] = pdf_a

        dense_a = jnp.sum(pdf_a * w2d, axis=-1, keepdims=True)   # (TB, 1, T, 1)
        term = 1.0 - dense_a
        no_coll = term if no_coll is None else no_coll * term

    coll_ref[...] = 1.0 - no_coll[:, 0]         # (TB, T, 1)


class CollisionProbabilityEstimatorPallas:
    def __init__(self, gauss_order_time: int, dT: float, gauss_order_space: int,
                 lat_buffer: float, long_buffer: float,
                 max_candidates_per_step: int | None = None):
        # 1-D Gauss-Legendre over time, interval (0, dT)
        xt, wt = np.polynomial.legendre.leggauss(gauss_order_time)
        self.time_nodes = jnp.asarray(0.5 * dT * (xt + 1.0), dtype=jnp.float32)
        self.wt = jnp.asarray(0.5 * dT * wt, dtype=jnp.float32)                 # (T,)

        # 2-D tensor-product GL over [-long_buffer, long_buffer] x [-lat_buffer, lat_buffer]
        xs, ws = np.polynomial.legendre.leggauss(gauss_order_space)
        u = long_buffer * xs
        wu = long_buffer * ws
        v = lat_buffer * xs
        wv = lat_buffer * ws
        U, V = np.meshgrid(u, v, indexing="ij")
        W = np.outer(wu, wv)
        self.lu = jnp.asarray(U.reshape(-1), dtype=jnp.float32)                 # (N2,)
        self.lv = jnp.asarray(V.reshape(-1), dtype=jnp.float32)
        self.w2d = jnp.asarray(W.reshape(-1), dtype=jnp.float32)

        self.T = gauss_order_time
        self.N2 = gauss_order_space * gauss_order_space
        self.max_candidates_per_step = max_candidates_per_step
        # single packed constant slab [lu; lv; w2d] -> one DMA for the whole grid
        self.space_consts = jnp.stack([self.lu, self.lv, self.w2d], axis=0
                                      ).reshape(3, 1, self.N2)
        # tangent_to_normal_rotmat = [[0,1],[-1,0]] (fixed) is folded analytically into the kernel.

    @staticmethod
    def _padded_tile_bytes(rows: int, cols: int) -> int:
        # f32 VMEM footprint of a (rows, cols) trailing tile after (8, 128) padding
        return ((rows + 7) // 8 * 8) * ((cols + 127) // 128 * 128) * 4

    def _choose_tb(self, B: int, A: int) -> int:
        T, N2 = self.T, self.N2
        p = self._padded_tile_bytes
        per_cand = (p(T, 4) + A * p(T, 5)          # inputs
                    + 2 * p(T, N2) + A * p(T, N2)  # gx, gy, pdf outputs
                    + p(T, 1))                     # coll output
        budget = 8 * 1024 * 1024                   # stay well inside 32 MiB default scoped VMEM
        tb = min(B, max(1, budget // (2 * per_cand)), 32)   # x2 for double-buffering
        if self.max_candidates_per_step is not None:
            tb = min(tb, self.max_candidates_per_step)
        return max(1, int(tb))

    def __call__(self, points, tangents, mean, cov):
        f32 = jnp.float32
        B, T, _ = points.shape
        A = mean.shape[1]
        N2 = self.N2
        assert T == self.T, "time axis must match gauss_order_time"

        # glue: pack inputs into two lane-friendly slabs
        pts = jnp.concatenate([points, tangents], axis=-1).astype(f32)          # (B, T, 4)
        mc = jnp.stack([mean[..., 0], mean[..., 1],
                        cov[..., 0, 0], cov[..., 0, 1], cov[..., 1, 1]],
                       axis=-1).astype(f32)                                     # (B, A, T, 5)

        TB = self._choose_tb(B, A)
        pad = (-B) % TB
        if pad:
            # edge-replicate so padded candidates stay finite (results are sliced off)
            pts = jnp.pad(pts, ((0, pad), (0, 0), (0, 0)), mode="edge")
            mc = jnp.pad(mc, ((0, pad), (0, 0), (0, 0), (0, 0)), mode="edge")
        Bp = B + pad
        nb = Bp // TB

        in_specs = [
            pl.BlockSpec((TB, T, 4), lambda i: (i, 0, 0)),        # packed points/tangents
            pl.BlockSpec((TB, A, T, 5), lambda i: (i, 0, 0, 0)),  # packed mean/cov
            pl.BlockSpec((3, 1, N2), lambda i: (0, 0, 0)),        # quadrature consts (fetched once)
        ]
        out_specs = [
            pl.BlockSpec((TB, T, N2), lambda i: (i, 0, 0)),       # gauss pts x
            pl.BlockSpec((TB, T, N2), lambda i: (i, 0, 0)),       # gauss pts y
            pl.BlockSpec((TB, A, T, N2), lambda i: (i, 0, 0, 0)), # gaussian pdf vals
            pl.BlockSpec((TB, T, 1), lambda i: (i, 0, 0)),        # collision probs
        ]
        out_shape = [
            jax.ShapeDtypeStruct((Bp, T, N2), f32),
            jax.ShapeDtypeStruct((Bp, T, N2), f32),
            jax.ShapeDtypeStruct((Bp, A, T, N2), f32),
            jax.ShapeDtypeStruct((Bp, T, 1), f32),
        ]

        gx, gy, pdf_vals, coll = pl.pallas_call(
            _collision_kernel,
            grid=(nb,),
            in_specs=in_specs,
            out_specs=out_specs,
            out_shape=out_shape,
            compiler_params=pltpu.CompilerParams(
                dimension_semantics=("parallel",)),
        )(pts, mc, self.space_consts)

        gauss_pts = jnp.stack([gx[:B], gy[:B]], axis=-1)          # (B, T, N2, 2)
        pdf_vals = pdf_vals[:B]                                   # (B, A, T, N2)
        collision_probs = coll[:B, :, 0]                          # (B, T)
        # lam / collision-free computed in the wrapper (trivial T-length reduction, fused by XLA)
        overall_lambdas = jnp.sum(collision_probs * self.wt[None, :], axis=-1)  # (B,)
        overall_cfree = jnp.exp(-overall_lambdas)                               # (B,)
        # TODO(synk): torch.distributions.MultivariateNormal has no Pallas/JAX object equivalent;
        #             the "mvn" return slot is the (mean, covariance) pair.
        return (gauss_pts, pdf_vals, (mean, cov),
                collision_probs, overall_lambdas, overall_cfree)


def _reference(points, tangents, mean, cov, lu, lv, w2d, wt):
    """Pure-JAX reference of the same semantics (for validation)."""
    normals = jnp.stack([-tangents[..., 1], tangents[..., 0]], axis=-1)        # (B,T,2)
    off = (tangents[:, :, None, :] * lu[None, None, :, None]
           + normals[:, :, None, :] * lv[None, None, :, None])                 # (B,T,N2,2)
    g = points[:, :, None, :] + off                                            # (B,T,N2,2)
    diff = g[:, None] - mean[:, :, :, None, :]                                 # (B,A,T,N2,2)
    cxx = cov[..., 0, 0]; cxy = cov[..., 0, 1]; cyy = cov[..., 1, 1]
    det = cxx * cyy - cxy * cxy
    ixx = cyy / det; iyy = cxx / det; ixy = -cxy / det
    dx = diff[..., 0]; dy = diff[..., 1]
    quad = ixx[..., None] * dx * dx + 2.0 * ixy[..., None] * dx * dy + iyy[..., None] * dy * dy
    pdf = jnp.exp(-0.5 * quad) / (2.0 * jnp.pi * jnp.sqrt(det))[..., None]     # (B,A,T,N2)
    dense = jnp.sum(pdf * w2d[None, None, None, :], axis=-1)                   # (B,A,T)
    coll = 1.0 - jnp.prod(1.0 - dense, axis=1)                                 # (B,T)
    lam = jnp.sum(coll * wt[None, :], axis=-1)                                 # (B,)
    return g, pdf, coll, lam, jnp.exp(-lam)


if __name__ == "__main__":
    B, A = 5, 4
    gauss_order_time = 8            # -> T = 8 temporal quadrature nodes
    gauss_order_space = 8           # -> N2 = 64 spatial quadrature points
    dT = 2.0
    lat_buffer, long_buffer = 1.0, 2.0

    # max_candidates_per_step=2 forces multiple grid steps (nb=3) + B padding in this small demo,
    # exercising the candidate-tiling path; leave it at None in real use (auto-sized from VMEM).
    est = CollisionProbabilityEstimatorPallas(gauss_order_time, dT, gauss_order_space,
                                              lat_buffer, long_buffer,
                                              max_candidates_per_step=2)

    key = jax.random.PRNGKey(0)
    k1, k2, k3, k4 = jax.random.split(key, 4)
    T = gauss_order_time
    points = 2.0 * jax.random.normal(k1, (B, T, 2), dtype=jnp.float32)
    tangents = jax.random.normal(k2, (B, T, 2), dtype=jnp.float32)
    tangents = tangents / jnp.linalg.norm(tangents, axis=-1, keepdims=True)
    mean = points[:, None, :, :] + 0.5 * jax.random.normal(k3, (B, A, T, 2), dtype=jnp.float32)
    L = 0.3 * jax.random.normal(k4, (B, A, T, 2, 2), dtype=jnp.float32)
    cov = L @ jnp.swapaxes(L, -1, -2) + 0.2 * jnp.eye(2, dtype=jnp.float32)

    outs = jax.block_until_ready(est(points, tangents, mean, cov))
    gauss_pts, pdf_vals, mvn, collision_probs, lambdas, cfree = outs

    g_r, pdf_r, coll_r, lam_r, cfree_r = _reference(points, tangents, mean, cov,
                                                    est.lu, est.lv, est.w2d, est.wt)
    np.testing.assert_allclose(np.asarray(gauss_pts), np.asarray(g_r), rtol=1e-5, atol=1e-5)
    np.testing.assert_allclose(np.asarray(pdf_vals), np.asarray(pdf_r), rtol=1e-4, atol=1e-6)
    np.testing.assert_allclose(np.asarray(collision_probs), np.asarray(coll_r), rtol=1e-4, atol=1e-6)
    np.testing.assert_allclose(np.asarray(lambdas), np.asarray(lam_r), rtol=1e-4, atol=1e-6)
    np.testing.assert_allclose(np.asarray(cfree), np.asarray(cfree_r), rtol=1e-4, atol=1e-6)

    print("KERNEL_OK")
</pallas_src>

<mosaic_0001>
module attributes {stable_mosaic.version = 11 : i64} {
  func.func @_collision_kernel(%arg0: i32, %arg1: memref<2x8x4xf32, #tpu.memory_space<vmem>>, %arg2: memref<2x4x8x5xf32, #tpu.memory_space<vmem>>, %arg3: memref<3x1x64xf32, #tpu.memory_space<vmem>>, %arg4: memref<2x8x64xf32, #tpu.memory_space<vmem>>, %arg5: memref<2x8x64xf32, #tpu.memory_space<vmem>>, %arg6: memref<2x4x8x64xf32, #tpu.memory_space<vmem>>, %arg7: memref<2x8x1xf32, #tpu.memory_space<vmem>>) attributes {dimension_semantics = [#tpu.dimension_semantics<parallel>], iteration_bounds = array<i64: 3>, scalar_prefetch = 0 : i64, scratch_operands = 0 : i64, tpu.core_type = #tpu.core_type<tc>, window_params = [{transform_indices = @transform_0, window_bounds = array<i64: 2, 8, 4>}, {transform_indices = @transform_1, window_bounds = array<i64: 2, 4, 8, 5>}, {pipeline_mode = #tpu.pipeline_mode<synchronous>, transform_indices = @transform_2, window_bounds = array<i64: 3, 1, 64>}, {transform_indices = @transform_3, window_bounds = array<i64: 2, 8, 64>}, {transform_indices = @transform_4, window_bounds = array<i64: 2, 8, 64>}, {transform_indices = @transform_5, window_bounds = array<i64: 2, 4, 8, 64>}, {transform_indices = @transform_6, window_bounds = array<i64: 2, 8, 1>}]} {
    %c0 = arith.constant 0 : index
    %c0_0 = arith.constant 0 : index
    %c0_1 = arith.constant 0 : index
    %0 = vector.load %arg3[%c0, %c0_0, %c0_1] : memref<3x1x64xf32, #tpu.memory_space<vmem>>, vector<3x1x64xf32>
    %1 = vector.extract_strided_slice %0 {offsets = [0, 0, 0], sizes = [1, 1, 64], strides = [1, 1, 1]} : vector<3x1x64xf32> to vector<1x1x64xf32>
    %2 = vector.extract_strided_slice %0 {offsets = [1, 0, 0], sizes = [1, 1, 64], strides = [1, 1, 1]} : vector<3x1x64xf32> to vector<1x1x64xf32>
    %3 = vector.extract_strided_slice %0 {offsets = [2, 0, 0], sizes = [1, 1, 64], strides = [1, 1, 1]} : vector<3x1x64xf32> to vector<1x1x64xf32>
    %4 = vector.shape_cast %3 : vector<1x1x64xf32> to vector<1x1x1x64xf32>
    %c0_2 = arith.constant 0 : index
    %c0_3 = arith.constant 0 : index
    %c0_4 = arith.constant 0 : index
    %5 = vector.load %arg1[%c0_2, %c0_3, %c0_4] : memref<2x8x4xf32, #tpu.memory_space<vmem>>, vector<2x8x4xf32>
    %6 = vector.extract_strided_slice %5 {offsets = [0, 0, 0], sizes = [2, 8, 1], strides = [1, 1, 1]} : vector<2x8x4xf32> to vector<2x8x1xf32>
    %7 = vector.extract_strided_slice %5 {offsets = [0, 0, 1], sizes = [2, 8, 1], strides = [1, 1, 1]} : vector<2x8x4xf32> to vector<2x8x1xf32>
    %8 = vector.extract_strided_slice %5 {offsets = [0, 0, 2], sizes = [2, 8, 1], strides = [1, 1, 1]} : vector<2x8x4xf32> to vector<2x8x1xf32>
    %9 = vector.extract_strided_slice %5 {offsets = [0, 0, 3], sizes = [2, 8, 1], strides = [1, 1, 1]} : vector<2x8x4xf32> to vector<2x8x1xf32>
    %10 = vector.broadcast %8 : vector<2x8x1xf32> to vector<2x8x64xf32>
    %11 = vector.broadcast %1 : vector<1x1x64xf32> to vector<2x8x64xf32>
    %12 = arith.mulf %10, %11 : vector<2x8x64xf32>
    %13 = vector.broadcast %6 : vector<2x8x1xf32> to vector<2x8x64xf32>
    %14 = arith.addf %13, %12 : vector<2x8x64xf32>
    %15 = vector.broadcast %9 : vector<2x8x1xf32> to vector<2x8x64xf32>
    %16 = vector.broadcast %2 : vector<1x1x64xf32> to vector<2x8x64xf32>
    %17 = arith.mulf %15, %16 : vector<2x8x64xf32>
    %18 = arith.subf %14, %17 : vector<2x8x64xf32>
    %19 = vector.broadcast %9 : vector<2x8x1xf32> to vector<2x8x64xf32>
    %20 = vector.broadcast %1 : vector<1x1x64xf32> to vector<2x8x64xf32>
    %21 = arith.mulf %19, %20 : vector<2x8x64xf32>
    %22 = vector.broadcast %7 : vector<2x8x1xf32> to vector<2x8x64xf32>
    %23 = arith.addf %22, %21 : vector<2x8x64xf32>
    %24 = vector.broadcast %8 : vector<2x8x1xf32> to vector<2x8x64xf32>
    %25 = vector.broadcast %2 : vector<1x1x64xf32> to vector<2x8x64xf32>
    %26 = arith.mulf %24, %25 : vector<2x8x64xf32>
    %27 = arith.addf %23, %26 : vector<2x8x64xf32>
    %c0_5 = arith.constant 0 : index
    %c0_6 = arith.constant 0 : index
    %c0_7 = arith.constant 0 : index
    %28 = vector.load %arg4[%c0_5, %c0_6, %c0_7] : memref<2x8x64xf32, #tpu.memory_space<vmem>>, vector<2x8x64xf32>
    tpu.vector_store %arg4[%c0_5, %c0_6, %c0_7], %18 {strides = array<i32>} : memref<2x8x64xf32, #tpu.memory_space<vmem>>, vector<2x8x64xf32>,
    %c0_8 = arith.constant 0 : index
    %c0_9 = arith.constant 0 : index
    %c0_10 = arith.constant 0 : index
    %29 = vector.load %arg5[%c0_8, %c0_9, %c0_10] : memref<2x8x64xf32, #tpu.memory_space<vmem>>, vector<2x8x64xf32>
    tpu.vector_store %arg5[%c0_8, %c0_9, %c0_10], %27 {strides = array<i32>} : memref<2x8x64xf32, #tpu.memory_space<vmem>>, vector<2x8x64xf32>,
    %30 = vector.shape_cast %18 : vector<2x8x64xf32> to vector<2x1x8x64xf32>
    %31 = vector.shape_cast %27 : vector<2x8x64xf32> to vector<2x1x8x64xf32>
    %c0_11 = arith.constant 0 : index
    %c0_12 = arith.constant 0 : index
    %c0_13 = arith.constant 0 : index
    %c0_14 = arith.constant 0 : index
    %32 = vector.load %arg2[%c0_11, %c0_12, %c0_13, %c0_14] : memref<2x4x8x5xf32, #tpu.memory_space<vmem>>, vector<2x1x8x5xf32>
    %33 = vector.extract_strided_slice %32 {offsets = [0, 0, 0, 0], sizes = [2, 1, 8, 1], strides = [1, 1, 1, 1]} : vector<2x1x8x5xf32> to vector<2x1x8x1xf32>
    %34 = vector.extract_strided_slice %32 {offsets = [0, 0, 0, 1], sizes = [2, 1, 8, 1], strides = [1, 1, 1, 1]} : vector<2x1x8x5xf32> to vector<2x1x8x1xf32>
    %35 = vector.extract_strided_slice %32 {offsets = [0, 0, 0, 2], sizes = [2, 1, 8, 1], strides = [1, 1, 1, 1]} : vector<2x1x8x5xf32> to vector<2x1x8x1xf32>
    %36 = vector.extract_strided_slice %32 {offsets = [0, 0, 0, 3], sizes = [2, 1, 8, 1], strides = [1, 1, 1, 1]} : vector<2x1x8x5xf32> to vector<2x1x8x1xf32>
    %37 = vector.extract_strided_slice %32 {offsets = [0, 0, 0, 4], sizes = [2, 1, 8, 1], strides = [1, 1, 1, 1]} : vector<2x1x8x5xf32> to vector<2x1x8x1xf32>
    %38 = arith.mulf %35, %37 : vector<2x1x8x1xf32>
    %39 = arith.mulf %36, %36 : vector<2x1x8x1xf32>
    %40 = arith.subf %38, %39 : vector<2x1x8x1xf32>
    %41 = math.rsqrt %40 : vector<2x1x8x1xf32>
    %42 = arith.mulf %41, %41 : vector<2x1x8x1xf32>
    %cst = arith.constant 0.159154937 : f32
    %43 = vector.broadcast %cst : f32 to vector<2x1x8x1xf32>
    %44 = arith.mulf %43, %41 : vector<2x1x8x1xf32>
    %45 = arith.mulf %37, %42 : vector<2x1x8x1xf32>
    %cst_15 = arith.constant 0.000000e+00 : f32
    %46 = vector.broadcast %cst_15 : f32 to vector<2x1x8x1xf32>
    %47 = arith.subf %46, %36 : vector<2x1x8x1xf32>
    %48 = arith.mulf %47, %42 : vector<2x1x8x1xf32>
    %49 = arith.mulf %35, %42 : vector<2x1x8x1xf32>
    %50 = vector.broadcast %33 : vector<2x1x8x1xf32> to vector<2x1x8x64xf32>
    %51 = arith.subf %30, %50 : vector<2x1x8x64xf32>
    %52 = vector.broadcast %34 : vector<2x1x8x1xf32> to vector<2x1x8x64xf32>
    %53 = arith.subf %31, %52 : vector<2x1x8x64xf32>
    %54 = vector.broadcast %45 : vector<2x1x8x1xf32> to vector<2x1x8x64xf32>
    %55 = arith.mulf %54, %51 : vector<2x1x8x64xf32>
    %56 = arith.mulf %55, %51 : vector<2x1x8x64xf32>
    %cst_16 = arith.constant 2.000000e+00 : f32
    %57 = vector.broadcast %cst_16 : f32 to vector<2x1x8x1xf32>
    %58 = arith.mulf %57, %48 : vector<2x1x8x1xf32>
    %59 = vector.broadcast %58 : vector<2x1x8x1xf32> to vector<2x1x8x64xf32>
    %60 = arith.mulf %59, %51 : vector<2x1x8x64xf32>
    %61 = arith.mulf %60, %53 : vector<2x1x8x64xf32>
    %62 = arith.addf %56, %61 : vector<2x1x8x64xf32>
    %63 = vector.broadcast %49 : vector<2x1x8x1xf32> to vector<2x1x8x64xf32>
    %64 = arith.mulf %63, %53 : vector<2x1x8x64xf32>
    %65 = arith.mulf %64, %53 : vector<2x1x8x64xf32>
    %66 = arith.addf %62, %65 : vector<2x1x8x64xf32>
    %cst_17 = arith.constant -5.000000e-01 : f32
    %67 = vector.broadcast %cst_17 : f32 to vector<2x1x8x64xf32>
    %68 = arith.mulf %67, %66 : vector<2x1x8x64xf32>
    %69 = math.exp %68 : vector<2x1x8x64xf32>
    %70 = vector.broadcast %44 : vector<2x1x8x1xf32> to vector<2x1x8x64xf32>
    %71 = arith.mulf %70, %69 : vector<2x1x8x64xf32>
    %c0_18 = arith.constant 0 : index
    %c0_19 = arith.constant 0 : index
    %c0_20 = arith.constant 0 : index
    %c0_21 = arith.constant 0 : index
    %72 = vector.load %arg6[%c0_18, %c0_19, %c0_20, %c0_21] : memref<2x4x8x64xf32, #tpu.memory_space<vmem>>, vector<2x1x8x64xf32>
    tpu.vector_store %arg6[%c0_18, %c0_19, %c0_20, %c0_21], %71 {strides = array<i32>} : memref<2x4x8x64xf32, #tpu.memory_space<vmem>>, vector<2x1x8x64xf32>,
    %73 = vector.broadcast %4 : vector<1x1x1x64xf32> to vector<2x1x8x64xf32>
    %74 = arith.mulf %71, %73 : vector<2x1x8x64xf32>
    %cst_22 = arith.constant dense<0.000000e+00> : vector<2x1x8xf32>
    %75 = vector.multi_reduction <add>, %74, %cst_22 [3] : vector<2x1x8x64xf32> to vector<2x1x8xf32>
    %76 = vector.shape_cast %75 : vector<2x1x8xf32> to vector<2x1x8x1xf32>
    %cst_23 = arith.constant 1.000000e+00 : f32
    %77 = vector.broadcast %cst_23 : f32 to vector<2x1x8x1xf32>
    %78 = arith.subf %77, %76 : vector<2x1x8x1xf32>
    %c0_24 = arith.constant 0 : index
    %c1 = arith.constant 1 : index
    %c0_25 = arith.constant 0 : index
    %c0_26 = arith.constant 0 : index
    %79 = vector.load %arg2[%c0_24, %c1, %c0_25, %c0_26] : memref<2x4x8x5xf32, #tpu.memory_space<vmem>>, vector<2x1x8x5xf32>
    %80 = vector.extract_strided_slice %79 {offsets = [0, 0, 0, 0], sizes = [2, 1, 8, 1], strides = [1, 1, 1, 1]} : vector<2x1x8x5xf32> to vector<2x1x8x1xf32>
    %81 = vector.extract_strided_slice %79 {offsets = [0, 0, 0, 1], sizes = [2, 1, 8, 1], strides = [1, 1, 1, 1]} : vector<2x1x8x5xf32> to vector<2x1x8x1xf32>
    %82 = vector.extract_strided_slice %79 {offsets = [0, 0, 0, 2], sizes = [2, 1, 8, 1], strides = [1, 1, 1, 1]} : vector<2x1x8x5xf32> to vector<2x1x8x1xf32>
    %83 = vector.extract_strided_slice %79 {offsets = [0, 0, 0, 3], sizes = [2, 1, 8, 1], strides = [1, 1, 1, 1]} : vector<2x1x8x5xf32> to vector<2x1x8x1xf32>
    %84 = vector.extract_strided_slice %79 {offsets = [0, 0, 0, 4], sizes = [2, 1, 8, 1], strides = [1, 1, 1, 1]} : vector<2x1x8x5xf32> to vector<2x1x8x1xf32>
    %85 = arith.mulf %82, %84 : vector<2x1x8x1xf32>
    %86 = arith.mulf %83, %83 : vector<2x1x8x1xf32>
    %87 = arith.subf %85, %86 : vector<2x1x8x1xf32>
    %88 = math.rsqrt %87 : vector<2x1x8x1xf32>
    %89 = arith.mulf %88, %88 : vector<2x1x8x1xf32>
    %cst_27 = arith.constant 0.159154937 : f32
    %90 = vector.broadcast %cst_27 : f32 to vector<2x1x8x1xf32>
    %91 = arith.mulf %90, %88 : vector<2x1x8x1xf32>
    %92 = arith.mulf %84, %89 : vector<2x1x8x1xf32>
    %cst_28 = arith.constant 0.000000e+00 : f32
    %93 = vector.broadcast %cst_28 : f32 to vector<2x1x8x1xf32>
    %94 = arith.subf %93, %83 : vector<2x1x8x1xf32>
    %95 = arith.mulf %94, %89 : vector<2x1x8x1xf32>
    %96 = arith.mulf %82, %89 : vector<2x1x8x1xf32>
    %97 = vector.broadcast %80 : vector<2x1x8x1xf32> to vector<2x1x8x64xf32>
    %98 = arith.subf %30, %97 : vector<2x1x8x64xf32>
    %99 = vector.broadcast %81 : vector<2x1x8x1xf32> to vector<2x1x8x64xf32>
    %100 = arith.subf %31, %99 : vector<2x1x8x64xf32>
    %101 = vector.broadcast %92 : vector<2x1x8x1xf32> to vector<2x1x8x64xf32>
    %102 = arith.mulf %101, %98 : vector<2x1x8x64xf32>
    %103 = arith.mulf %102, %98 : vector<2x1x8x64xf32>
    %cst_29 = arith.constant 2.000000e+00 : f32
    %104 = vector.broadcast %cst_29 : f32 to vector<2x1x8x1xf32>
    %105 = arith.mulf %104, %95 : vector<2x1x8x1xf32>
    %106 = vector.broadcast %105 : vector<2x1x8x1xf32> to vector<2x1x8x64xf32>
    %107 = arith.mulf %106, %98 : vector<2x1x8x64xf32>
    %108 = arith.mulf %107, %100 : vector<2x1x8x64xf32>
    %109 = arith.addf %103, %108 : vector<2x1x8x64xf32>
    %110 = vector.broadcast %96 : vector<2x1x8x1xf32> to vector<2x1x8x64xf32>
    %111 = arith.mulf %110, %100 : vector<2x1x8x64xf32>
    %112 = arith.mulf %111, %100 : vector<2x1x8x64xf32>
    %113 = arith.addf %109, %112 : vector<2x1x8x64xf32>
    %cst_30 = arith.constant -5.000000e-01 : f32
    %114 = vector.broadcast %cst_30 : f32 to vector<2x1x8x64xf32>
    %115 = arith.mulf %114, %113 : vector<2x1x8x64xf32>
    %116 = math.exp %115 : vector<2x1x8x64xf32>
    %117 = vector.broadcast %91 : vector<2x1x8x1xf32> to vector<2x1x8x64xf32>
    %118 = arith.mulf %117, %116 : vector<2x1x8x64xf32>
    %c0_31 = arith.constant 0 : index
    %c1_32 = arith.constant 1 : index
    %c0_33 = arith.constant 0 : index
    %c0_34 = arith.constant 0 : index
    %119 = vector.load %arg6[%c0_31, %c1_32, %c0_33, %c0_34] : memref<2x4x8x64xf32, #tpu.memory_space<vmem>>, vector<2x1x8x64xf32>
    tpu.vector_store %arg6[%c0_31, %c1_32, %c0_33, %c0_34], %118 {strides = array<i32>} : memref<2x4x8x64xf32, #tpu.memory_space<vmem>>, vector<2x1x8x64xf32>,
    %120 = vector.broadcast %4 : vector<1x1x1x64xf32> to vector<2x1x8x64xf32>
    %121 = arith.mulf %118, %120 : vector<2x1x8x64xf32>
    %cst_35 = arith.constant dense<0.000000e+00> : vector<2x1x8xf32>
    %122 = vector.multi_reduction <add>, %121, %cst_35 [3] : vector<2x1x8x64xf32> to vector<2x1x8xf32>
    %123 = vector.shape_cast %122 : vector<2x1x8xf32> to vector<2x1x8x1xf32>
    %cst_36 = arith.constant 1.000000e+00 : f32
    %124 = vector.broadcast %cst_36 : f32 to vector<2x1x8x1xf32>
    %125 = arith.subf %124, %123 : vector<2x1x8x1xf32>
    %126 = arith.mulf %78, %125 : vector<2x1x8x1xf32>
    %c0_37 = arith.constant 0 : index
    %c2 = arith.constant 2 : index
    %c0_38 = arith.constant 0 : index
    %c0_39 = arith.constant 0 : index
    %127 = vector.load %arg2[%c0_37, %c2, %c0_38, %c0_39] : memref<2x4x8x5xf32, #tpu.memory_space<vmem>>, vector<2x1x8x5xf32>
    %128 = vector.extract_strided_slice %127 {offsets = [0, 0, 0, 0], sizes = [2, 1, 8, 1], strides = [1, 1, 1, 1]} : vector<2x1x8x5xf32> to vector<2x1x8x1xf32>
    %129 = vector.extract_strided_slice %127 {offsets = [0, 0, 0, 1], sizes = [2, 1, 8, 1], strides = [1, 1, 1, 1]} : vector<2x1x8x5xf32> to vector<2x1x8x1xf32>
    %130 = vector.extract_strided_slice %127 {offsets = [0, 0, 0, 2], sizes = [2, 1, 8, 1], strides = [1, 1, 1, 1]} : vector<2x1x8x5xf32> to vector<2x1x8x1xf32>
    %131 = vector.extract_strided_slice %127 {offsets = [0, 0, 0, 3], sizes = [2, 1, 8, 1], strides = [1, 1, 1, 1]} : vector<2x1x8x5xf32> to vector<2x1x8x1xf32>
    %132 = vector.extract_strided_slice %127 {offsets = [0, 0, 0, 4], sizes = [2, 1, 8, 1], strides = [1, 1, 1, 1]} : vector<2x1x8x5xf32> to vector<2x1x8x1xf32>
    %133 = arith.mulf %130, %132 : vector<2x1x8x1xf32>
    %134 = arith.mulf %131, %131 : vector<2x1x8x1xf32>
    %135 = arith.subf %133, %134 : vector<2x1x8x1xf32>
    %136 = math.rsqrt %135 : vector<2x1x8x1xf32>
    %137 = arith.mulf %136, %136 : vector<2x1x8x1xf32>
    %cst_40 = arith.constant 0.159154937 : f32
    %138 = vector.broadcast %cst_40 : f32 to vector<2x1x8x1xf32>
    %139 = arith.mulf %138, %136 : vector<2x1x8x1xf32>
    %140 = arith.mulf %132, %137 : vector<2x1x8x1xf32>
    %cst_41 = arith.constant 0.000000e+00 : f32
    %141 = vector.broadcast %cst_41 : f32 to vector<2x1x8x1xf32>
    %142 = arith.subf %141, %131 : vector<2x1x8x1xf32>
    %143 = arith.mulf %142, %137 : vector<2x1x8x1xf32>
    %144 = arith.mulf %130, %137 : vector<2x1x8x1xf32>
    %145 = vector.broadcast %128 : vector<2x1x8x1xf32> to vector<2x1x8x64xf32>
    %146 = arith.subf %30, %145 : vector<2x1x8x64xf32>
    %147 = vector.broadcast %129 : vector<2x1x8x1xf32> to vector<2x1x8x64xf32>
    %148 = arith.subf %31, %147 : vector<2x1x8x64xf32>
    %149 = vector.broadcast %140 : vector<2x1x8x1xf32> to vector<2x1x8x64xf32>
    %150 = arith.mulf %149, %146 : vector<2x1x8x64xf32>
    %151 = arith.mulf %150, %146 : vector<2x1x8x64xf32>
    %cst_42 = arith.constant 2.000000e+00 : f32
    %152 = vector.broadcast %cst_42 : f32 to vector<2x1x8x1xf32>
    %153 = arith.mulf %152, %143 : vector<2x1x8x1xf32>
    %154 = vector.broadcast %153 : vector<2x1x8x1xf32> to vector<2x1x8x64xf32>
    %155 = arith.mulf %154, %146 : vector<2x1x8x64xf32>
    %156 = arith.mulf %155, %148 : vector<2x1x8x64xf32>
    %157 = arith.addf %151, %156 : vector<2x1x8x64xf32>
    %158 = vector.broadcast %144 : vector<2x1x8x1xf32> to vector<2x1x8x64xf32>
    %159 = arith.mulf %158, %148 : vector<2x1x8x64xf32>
    %160 = arith.mulf %159, %148 : vector<2x1x8x64xf32>
    %161 = arith.addf %157, %160 : vector<2x1x8x64xf32>
    %cst_43 = arith.constant -5.000000e-01 : f32
    %162 = vector.broadcast %cst_43 : f32 to vector<2x1x8x64xf32>
    %163 = arith.mulf %162, %161 : vector<2x1x8x64xf32>
    %164 = math.exp %163 : vector<2x1x8x64xf32>
    %165 = vector.broadcast %139 : vector<2x1x8x1xf32> to vector<2x1x8x64xf32>
    %166 = arith.mulf %165, %164 : vector<2x1x8x64xf32>
    %c0_44 = arith.constant 0 : index
    %c2_45 = arith.constant 2 : index
    %c0_46 = arith.constant 0 : index
    %c0_47 = arith.constant 0 : index
    %167 = vector.load %arg6[%c0_44, %c2_45, %c0_46, %c0_47] : memref<2x4x8x64xf32, #tpu.memory_space<vmem>>, vector<2x1x8x64xf32>
    tpu.vector_store %arg6[%c0_44, %c2_45, %c0_46, %c0_47], %166 {strides = array<i32>} : memref<2x4x8x64xf32, #tpu.memory_space<vmem>>, vector<2x1x8x64xf32>,
    %168 = vector.broadcast %4 : vector<1x1x1x64xf32> to vector<2x1x8x64xf32>
    %169 = arith.mulf %166, %168 : vector<2x1x8x64xf32>
    %cst_48 = arith.constant dense<0.000000e+00> : vector<2x1x8xf32>
    %170 = vector.multi_reduction <add>, %169, %cst_48 [3] : vector<2x1x8x64xf32> to vector<2x1x8xf32>
    %171 = vector.shape_cast %170 : vector<2x1x8xf32> to vector<2x1x8x1xf32>
    %cst_49 = arith.constant 1.000000e+00 : f32
    %172 = vector.broadcast %cst_49 : f32 to vector<2x1x8x1xf32>
    %173 = arith.subf %172, %171 : vector<2x1x8x1xf32>
    %174 = arith.mulf %126, %173 : vector<2x1x8x1xf32>
    %c0_50 = arith.constant 0 : index
    %c3 = arith.constant 3 : index
    %c0_51 = arith.constant 0 : index
    %c0_52 = arith.constant 0 : index
    %175 = vector.load %arg2[%c0_50, %c3, %c0_51, %c0_52] : memref<2x4x8x5xf32, #tpu.memory_space<vmem>>, vector<2x1x8x5xf32>
    %176 = vector.extract_strided_slice %175 {offsets = [0, 0, 0, 0], sizes = [2, 1, 8, 1], strides = [1, 1, 1, 1]} : vector<2x1x8x5xf32> to vector<2x1x8x1xf32>
    %177 = vector.extract_strided_slice %175 {offsets = [0, 0, 0, 1], sizes = [2, 1, 8, 1], strides = [1, 1, 1, 1]} : vector<2x1x8x5xf32> to vector<2x1x8x1xf32>
    %178 = vector.extract_strided_slice %175 {offsets = [0, 0, 0, 2], sizes = [2, 1, 8, 1], strides = [1, 1, 1, 1]} : vector<2x1x8x5xf32> to vector<2x1x8x1xf32>
    %179 = vector.extract_strided_slice %175 {offsets = [0, 0, 0, 3], sizes = [2, 1, 8, 1], strides = [1, 1, 1, 1]} : vector<2x1x8x5xf32> to vector<2x1x8x1xf32>
    %180 = vector.extract_strided_slice %175 {offsets = [0, 0, 0, 4], sizes = [2, 1, 8, 1], strides = [1, 1, 1, 1]} : vector<2x1x8x5xf32> to vector<2x1x8x1xf32>
    %181 = arith.mulf %178, %180 : vector<2x1x8x1xf32>
    %182 = arith.mulf %179, %179 : vector<2x1x8x1xf32>
    %183 = arith.subf %181, %182 : vector<2x1x8x1xf32>
    %184 = math.rsqrt %183 : vector<2x1x8x1xf32>
    %185 = arith.mulf %184, %184 : vector<2x1x8x1xf32>
    %cst_53 = arith.constant 0.159154937 : f32
    %186 = vector.broadcast %cst_53 : f32 to vector<2x1x8x1xf32>
    %187 = arith.mulf %186, %184 : vector<2x1x8x1xf32>
    %188 = arith.mulf %180, %185 : vector<2x1x8x1xf32>
    %cst_54 = arith.constant 0.000000e+00 : f32
    %189 = vector.broadcast %cst_54 : f32 to vector<2x1x8x1xf32>
    %190 = arith.subf %189, %179 : vector<2x1x8x1xf32>
    %191 = arith.mulf %190, %185 : vector<2x1x8x1xf32>
    %192 = arith.mulf %178, %185 : vector<2x1x8x1xf32>
    %193 = vector.broadcast %176 : vector<2x1x8x1xf32> to vector<2x1x8x64xf32>
    %194 = arith.subf %30, %193 : vector<2x1x8x64xf32>
    %195 = vector.broadcast %177 : vector<2x1x8x1xf32> to vector<2x1x8x64xf32>
    %196 = arith.subf %31, %195 : vector<2x1x8x64xf32>
    %197 = vector.broadcast %188 : vector<2x1x8x1xf32> to vector<2x1x8x64xf32>
    %198 = arith.mulf %197, %194 : vector<2x1x8x64xf32>
    %199 = arith.mulf %198, %194 : vector<2x1x8x64xf32>
    %cst_55 = arith.constant 2.000000e+00 : f32
    %200 = vector.broadcast %cst_55 : f32 to vector<2x1x8x1xf32>
    %201 = arith.mulf %200, %191 : vector<2x1x8x1xf32>
    %202 = vector.broadcast %201 : vector<2x1x8x1xf32> to vector<2x1x8x64xf32>
    %203 = arith.mulf %202, %194 : vector<2x1x8x64xf32>
    %204 = arith.mulf %203, %196 : vector<2x1x8x64xf32>
    %205 = arith.addf %199, %204 : vector<2x1x8x64xf32>
    %206 = vector.broadcast %192 : vector<2x1x8x1xf32> to vector<2x1x8x64xf32>
    %207 = arith.mulf %206, %196 : vector<2x1x8x64xf32>
    %208 = arith.mulf %207, %196 : vector<2x1x8x64xf32>
    %209 = arith.addf %205, %208 : vector<2x1x8x64xf32>
    %cst_56 = arith.constant -5.000000e-01 : f32
    %210 = vector.broadcast %cst_56 : f32 to vector<2x1x8x64xf32>
    %211 = arith.mulf %210, %209 : vector<2x1x8x64xf32>
    %212 = math.exp %211 : vector<2x1x8x64xf32>
    %213 = vector.broadcast %187 : vector<2x1x8x1xf32> to vector<2x1x8x64xf32>
    %214 = arith.mulf %213, %212 : vector<2x1x8x64xf32>
    %c0_57 = arith.constant 0 : index
    %c3_58 = arith.constant 3 : index
    %c0_59 = arith.constant 0 : index
    %c0_60 = arith.constant 0 : index
    %215 = vector.load %arg6[%c0_57, %c3_58, %c0_59, %c0_60] : memref<2x4x8x64xf32, #tpu.memory_space<vmem>>, vector<2x1x8x64xf32>
    tpu.vector_store %arg6[%c0_57, %c3_58, %c0_59, %c0_60], %214 {strides = array<i32>} : memref<2x4x8x64xf32, #tpu.memory_space<vmem>>, vector<2x1x8x64xf32>,
    %216 = vector.broadcast %4 : vector<1x1x1x64xf32> to vector<2x1x8x64xf32>
    %217 = arith.mulf %214, %216 : vector<2x1x8x64xf32>
    %cst_61 = arith.constant dense<0.000000e+00> : vector<2x1x8xf32>
    %218 = vector.multi_reduction <add>, %217, %cst_61 [3] : vector<2x1x8x64xf32> to vector<2x1x8xf32>
    %219 = vector.shape_cast %218 : vector<2x1x8xf32> to vector<2x1x8x1xf32>
    %cst_62 = arith.constant 1.000000e+00 : f32
    %220 = vector.broadcast %cst_62 : f32 to vector<2x1x8x1xf32>
    %221 = arith.subf %220, %219 : vector<2x1x8x1xf32>
    %222 = arith.mulf %174, %221 : vector<2x1x8x1xf32>
    %223 = vector.shape_cast %222 : vector<2x1x8x1xf32> to vector<2x8x1xf32>
    %cst_63 = arith.constant 1.000000e+00 : f32
    %224 = vector.broadcast %cst_63 : f32 to vector<2x8x1xf32>
    %225 = arith.subf %224, %223 : vector<2x8x1xf32>
    %c0_64 = arith.constant 0 : index
    %c0_65 = arith.constant 0 : index
    %c0_66 = arith.constant 0 : index
    %226 = vector.load %arg7[%c0_64, %c0_65, %c0_66] : memref<2x8x1xf32, #tpu.memory_space<vmem>>, vector<2x8x1xf32>
    tpu.vector_store %arg7[%c0_64, %c0_65, %c0_66], %225 {strides = array<i32>} : memref<2x8x1xf32, #tpu.memory_space<vmem>>, vector<2x8x1xf32>,
    return
  }
  func.func @transform_0(%arg0: i32) -> (i32, i32, i32) {
    %c0_i32 = arith.constant 0 : i32
    %c0_i32_0 = arith.constant 0 : i32
    %c0_i32_1 = arith.constant 0 : i32
    return %arg0, %c0_i32, %c0_i32_0 : i32, i32, i32
  }
  func.func @transform_1(%arg0: i32) -> (i32, i32, i32, i32) {
    %c0_i32 = arith.constant 0 : i32
    %c0_i32_0 = arith.constant 0 : i32
    %c0_i32_1 = arith.constant 0 : i32
    %c0_i32_2 = arith.constant 0 : i32
    return %arg0, %c0_i32, %c0_i32_0, %c0_i32_1 : i32, i32, i32, i32
  }
  func.func @transform_2(%arg0: i32) -> (i32, i32, i32) {
    %c0_i32 = arith.constant 0 : i32
    %c0_i32_0 = arith.constant 0 : i32
    %c0_i32_1 = arith.constant 0 : i32
    %c0_i32_2 = arith.constant 0 : i32
    return %c0_i32, %c0_i32_0, %c0_i32_1 : i32, i32, i32
  }
  func.func @transform_3(%arg0: i32) -> (i32, i32, i32) {
    %c0_i32 = arith.constant 0 : i32
    %c0_i32_0 = arith.constant 0 : i32
    %c0_i32_1 = arith.constant 0 : i32
    return %arg0, %c0_i32, %c0_i32_0 : i32, i32, i32
  }
  func.func @transform_4(%arg0: i32) -> (i32, i32, i32) {
    %c0_i32 = arith.constant 0 : i32
    %c0_i32_0 = arith.constant 0 : i32
    %c0_i32_1 = arith.constant 0 : i32
    return %arg0, %c0_i32, %c0_i32_0 : i32, i32, i32
  }
  func.func @transform_5(%arg0: i32) -> (i32, i32, i32, i32) {
    %c0_i32 = arith.constant 0 : i32
    %c0_i32_0 = arith.constant 0 : i32
    %c0_i32_1 = arith.constant 0 : i32
    %c0_i32_2 = arith.constant 0 : i32
    return %arg0, %c0_i32, %c0_i32_0, %c0_i32_1 : i32, i32, i32, i32
  }
  func.func @transform_6(%arg0: i32) -> (i32, i32, i32) {
    %c0_i32 = arith.constant 0 : i32
    %c0_i32_0 = arith.constant 0 : i32
    %c0_i32_1 = arith.constant 0 : i32
    return %arg0, %c0_i32, %c0_i32_0 : i32, i32, i32
  }
}

</mosaic_0001>

<bundles_post_ra>
// kernel: tpu_custom_call.1
= control target key start
LH: loop header
LB: loop body
LE: loop exit
PB: predicated region body
PF: predicated region fallthrough
CT: control target
= control target key end

     0   :  { %s2147_s0 = inlined_call_operand.vmem [shape: f32[6,8,4], index: 0, kind: input, shape index: {}]   ;;  %s2148_s1 = inlined_call_operand.vmem [shape: f32[6,4,8,5], index: 1, kind: input, shape index: {}]   ;;  %s2149_s2 = inlined_call_operand.vmem [shape: f32[3,1,64], index: 2, kind: input, shape index: {}]   ;;  %s2150_s3 = inlined_call_operand.hbm [shape: f32[6,8,64], index: 3, kind: output, shape index: {0}]   ;;  %s2151_s4 = inlined_call_operand.hbm [shape: f32[6,8,64], index: 4, kind: output, shape index: {1}]   ;;  %s2152_s5 = inlined_call_operand.hbm [shape: f32[6,4,8,64], index: 5, kind: output, shape index: {2}]   ;;  %s2153_s6 = inlined_call_operand.vmem [shape: f32[6,8,1], index: 6, kind: output, shape index: {3}]  }
   0x1   :  { %2156 = sst [smem:[#allocation9_spill]] %s2147_s0 }
   0x2   :  { %2157 = sst [smem:[#allocation10_spill]] %s2148_s1 }
   0x3   :  { %2158 = sst [smem:[#allocation11_spill]] %s2149_s2 }
   0x4   :  { %12 = vsyncpa [#allocation3], 0 }
   0x5   :  { %14 = vsyncpa [#allocation3 + $0x1], 0 }
   0x6   :  { %15 = vsyncpa [#allocation5], 0 }
   0x7   :  { %17 = vsyncpa [#allocation5 + $0x1], 0  ;;  %s1565_s21 = smov 0   ;;  %s1567_s22 = smov 0  }
   0x8   :  { %s1569_s23 = smov 0   ;;  %s1571_s24 = smov 0  }
   0x9 LB: > { %s1586_s25 = sadd.s32 4294967295, %s1514_s24   ;;  %s2154_s26 = sadd.s32 4294967294, %s1514_s24   ;;  %s1514_s24 = sphi %s1571_s24, %s2169_s24   ;;  %s1510_s23 = sphi %s1569_s23, %s2168_s23   ;;  %s1506_s22 = sphi %s1567_s22, %s2167_s22   ;;  %s1502_s21 = sphi %s1565_s21, %s2166_s21  }
   0xa   : > { %s1590_s27 = sadd.s32 1, %s1514_s24   ;;  %s103_s28 = sadd.s32 1, %s1510_s23 }
   0xb   : > { %s100_s29 = ssub.s32 %s1514_s24, %s1590_s27  ;;  %p113_p0 = scmp.ne.s32.totalorder %s1510_s23, %s1506_s22 }
   0xc   : > { %p101_p1 = scmp.eq.s32.totalorder %s100_s29, 0  ;;  %p114_p2 = scmp.eq.s32.totalorder %s1586_s25, 2 }
   0xd   : > { %p119_p3 = scmp.ne.s32.totalorder %s1506_s22, %s1502_s21  ;;  %p120_p4 = scmp.eq.s32.totalorder %s2154_s26, 2 }
   0xe   : > { %s1603_s30 = scalar_select %p101_p1, %s1510_s23, %s103_s28  }
   0xf   : > { %p1605_p5 = por %p114_p2, %p113_p0  ;;  %p1609_p6 = por %p120_p4, %p119_p3 }
  0x10   : > { %p1235_p7 = scmp.ge.s32.totalorder %s1514_s24, 1  ;;  %p238_p8 = scmp.lt.s32.totalorder %s1514_s24, 4 }
  0x12   : > { %p239_p9 = pnand %p1235_p7, %p238_p8 }
  0x13   : > { %s1239_s9 = sshll.u32 (!%p239_p9), %s1586_s25, 1  ;;  %v1516_v0 = vmov (!%p239_p9), 0   ;;  %s2161_s0 = sld [smem:[#allocation9_spill]] (!%p239_p9)  ;;  %v1518_v8 = vmov (!%p239_p9), 3   ;;  %v1519_v11 = vmov (!%p239_p9), 1   ;;  %v1521_v21 = vmov (!%p239_p9), 2  }
  0x14   : > { %242 = sbr.rel (%p239_p9) target bundleno = 700 (0x2bc), region = 32  ;;  %1338 = vset.pattern.permute.xlu1 (!%p239_p9), %v1516_v0  ;;  %p290_p10 = scmp.lt.s32.totalorder (!%p239_p9), %s1239_s9, 5  ;;  %1341 = vset.pattern.permute.xlu0 (!%p239_p9), %v1516_v0  ;;  %vm378_vm0 = vcmask (!%p239_p9), 523264  }
  0x15   : > { %s2162_s1 = sld [smem:[#allocation10_spill]] (!%p239_p9)  ;;  %s1517_s18 = smov (!%p239_p9), 127  }
  0x16   : > { %s1520_s19 = smov (!%p239_p9), 126   ;;  %s1522_s20 = smov (!%p239_p9), 2  }
  0x17   : > { %s1523_s28 = smov (!%p239_p9), 1   ;;  %s2163_s2 = sld [smem:[#allocation11_spill]] (!%p239_p9) }
  0x18   : > { %s1869_s12 = sand.u32 (!%p239_p9), 1, %s1506_s22   ;;  %s1011_s29 = sand.u32 (!%p239_p9), 1, %s1586_s25  }
  0x19   : > { %s1236_s13 = sshll.u32 (!%p239_p9), %s1869_s12, 4 }
  0x1a   : > { %s1890_s16 = scalar_lea.vmem (!%p239_p9), [#allocation4], %s1236_s13 }
  0x1b   : > { %s2171_s9 = smov (!%p290_p10, %s1239_s9), 5 }
  0x1c   : > { %s2155_s10 = sshll.u32 %s2171_s9, 3  ;;  %s1273_s11 = sshll.u32 %s2171_s9, 5 }
  0x1d   : > { %s293_s14 = scalar_lea.vmem %s2161_s0, %s2155_s10  ;;  %s1630_s17 = scalar_lea.vmem %s2162_s1, %s1273_s11 }
  0x1e   : > { %v1632_v1 = vld [vmem:[%s293_s14] sm:$0xff]  ;;  %v1640_v4 = vld [vmem:[%s293_s14 + $0x8] sm:$0xff]  ;;  %v1659_v10 = vld [vmem:[%s1630_s17 + $0x10] sm:$0xff]  ;;  %s1274_s11 = sshll.u32 %s1586_s25, 8  ;;  %s2032_s10 = scalar_lea.sflag [#allocation5], %s1011_s29 }
  0x1f   : > { %v1635_v2 = vld [vmem:[%s1630_s17] sm:$0xff]  ;;  %335 = vperm.xlu1 %1338, %v1632_v1   ;;  %v1644_v5 = vld [vmem:[%s1630_s17 + $0x8] sm:$0xff]  ;;  %v706_v12 = vmul.f32 %v1659_v10, %v1659_v10  ;;  %v1667_v13 = vld [vmem:[%s1630_s17 + $0x30] sm:$0xff]  ;;  %s2022_s15 = scalar_lea.hbm %s2151_s4, %s1274_s11  ;;  %s2030_s26 = scalar_lea.hbm %s2150_s3, %s1274_s11 }
  0x20   : > { %v395_v3 = vmul.f32 %v1635_v2, %v1635_v2  ;;  %v552_v6 = vmul.f32 %v1644_v5, %v1644_v5  ;;  %v1651_v7 = vld [vmem:[%s1630_s17 + $0x28] sm:$0xff]  ;;  %v707_v14 = vmul.f32 %v1667_v13, %v1667_v13  ;;  %v1674_v15 = vld [vmem:[%s1630_s17 + $0x20] sm:$0xff]  ;;  %v1677_v16 = vld [vmem:[%s1630_s17 + $0x18] sm:$0xff] }
  0x21   : > { %v553_v9 = vmul.f32 %v1651_v7, %v1651_v7  ;;  %v860_v17 = vmul.f32 %v1677_v16, %v1677_v16  ;;  %v396_v18 = vmul.f32 %v1674_v15, %v1674_v15  ;;  %v1703_v19 = vld [vmem:[%s1630_s17 + $0x38] sm:$0xff]  ;;  %s1898_s17 = scalar_lea.vmem [#allocation2], %s1236_s13  ;;  %s1525_s13 = smov [#allocation4]  }
  0x22   : > { %399 = vrot.lane.b32.xlu0 %v395_v3, %s1517_s18  ;;  %v861_v20 = vmul.f32 %v1703_v19, %v1703_v19  ;;  %s1396_s14 = sshll.u32 %s1525_s13, 4  ;;  %s1397_s14 = int_to_ptr.vmem [resolvable:$false] %s1396_s14 }
  0x23   : > { %339 = vperm.xlu1 %1338, %v1640_v4  }
  0x26   : > { %436 = vperm.xlu0 %1341, %v1635_v2  }
  0x27   : > { %1339 = vset.pattern.permute.xlu1 %v1518_v8 }
  0x28   : > { %349 = vperm.xlu1 %1339, %v1640_v4  }
  0x2a   : > { %556 = vrot.lane.b32.xlu0 %v552_v6, %s1517_s18 }
  0x2c   : > { %1340 = vset.pattern.permute.xlu1 %v1519_v11 }
  0x2d   : > { %365 = vperm.xlu1 %1340, %v1632_v1  }
  0x2e   : > { %558 = vrot.lane.b32.xlu0 %v553_v9, %s1517_s18 }
  0x31   : > { %387 = vrot.lane.b32.xlu1 %v1635_v2, %s1520_s19 }
  0x32   : > { %710 = vrot.lane.b32.xlu0 %v706_v12, %s1517_s18  ;;  %1342 = vset.pattern.permute.xlu1 %v1516_v0 }
  0x35   : > { %389 = vrot.lane.b32.xlu1 %v1674_v15, %s1520_s19 }
  0x36   : > { %712 = vrot.lane.b32.xlu0 %v707_v14, %s1517_s18 }
  0x39   : > { %401 = vrot.lane.b32.xlu1 %v396_v18, %s1517_s18 }
  0x3a   : > { %864 = vrot.lane.b32.xlu0 %v860_v17, %s1517_s18 }
  0x3d   : > { %440 = vperm.xlu1 %1342, %v1674_v15  }
  0x3e   : > { %593 = vperm.xlu0 %1341, %v1644_v5  }
  0x41   : > { %1343 = vset.pattern.permute.xlu1 %v1519_v11 }
  0x42   : > { %901 = vperm.xlu0 %1341, %v1677_v16   ;;  %446 = vperm.xlu1 %1343, %v1635_v2  }
  0x46   : > { %1347 = vset.pattern.permute.xlu0 %v1519_v11  ;;  %544 = vrot.lane.b32.xlu1 %v1644_v5, %s1520_s19 }
  0x47   : > { %369 = vperm.xlu0 %1347, %v1640_v4   ;;  %1344 = vset.pattern.permute.xlu1 %v1516_v0 }
  0x4a   : > { %546 = vrot.lane.b32.xlu1 %v1651_v7, %s1520_s19 }
  0x4b   : > { %450 = vperm.xlu0 %1347, %v1674_v15  }
  0x4e   : > { %698 = vrot.lane.b32.xlu1 %v1659_v10, %s1520_s19 }
  0x52   : > { %700 = vrot.lane.b32.xlu1 %v1667_v13, %s1520_s19 }
  0x56   : > { %852 = vrot.lane.b32.xlu1 %v1677_v16, %s1520_s19 }
  0x5a   : > { %854 = vrot.lane.b32.xlu1 %v1703_v19, %s1520_s19 }
  0x5e   : > { %866 = vrot.lane.b32.xlu1 %v861_v20, %s1517_s18  ;;  %s1238_s18 = sshll.u32 %s1869_s12, 6 }
  0x62   : > { %597 = vperm.xlu1 %1344, %v1651_v7  }
  0x66   : > { %1345 = vset.pattern.permute.xlu1 %v1519_v11 }
  0x67   : > { %603 = vperm.xlu1 %1345, %v1644_v5  }
  0x6b   : > { %1346 = vset.pattern.permute.xlu1 %v1516_v0 }
  0x6c   : > { %747 = vperm.xlu1 %1346, %v1659_v10  }
  0x70   : > { %751 = vperm.xlu1 %1346, %v1667_v13  }
  0x74   : > { %1348 = vset.pattern.permute.xlu1 %v1521_v21 }
  0x94   : > { %v400_v28 = vpop.permute.xlu0 %399 }
  0x9e   : > { %v1716_v22 = vpop.permute.xlu1 %335 }
  0xa2   : > { %v1718_v23 = vpop.permute.xlu1 %339 }
  0xa5   : > { %v1726_v33 = vpop.permute.xlu0 %436 }
  0xa7   : > { %v1720_v24 = vpop.permute.xlu1 %349 }
  0xa9   : > { %v557_v37 = vpop.permute.xlu0 %556 }
  0xac   : > { %v1722_v25 = vpop.permute.xlu1 %365 }
  0xad   : > { %v559_v41 = vpop.permute.xlu0 %558 }
  0xb0   : > { %v388_v26 = vpop.permute.xlu1 %387 }
  0xb1   : > { %v393_v27 = vmul.f32 %v388_v26, %v1635_v2  ;;  %v711_v48 = vpop.permute.xlu0 %710 }
  0xb3   : > { %v405_v29 = vsub.f32 %v393_v27, %v400_v28 }
  0xb4   : > { %v390_v30 = vpop.permute.xlu1 %389 }
  0xb5   : > { %1360 = vrsqrt.f32 %v405_v29  ;;  %v394_v31 = vmul.f32 %v390_v30, %v1674_v15  ;;  %v713_v54 = vpop.permute.xlu0 %712 }
  0xb8   : > { %v402_v32 = vpop.permute.xlu1 %401 }
  0xb9   : > { %v406_v34 = vsub.f32 %v394_v31, %v402_v32  ;;  %v865_v63 = vpop.permute.xlu0 %864 }
  0xbb   : > { %1362 = vrsqrt.f32 %v406_v34 }
  0xbc   : > { %v1728_v35 = vpop.permute.xlu1 %440 }
  0xbf   : > { %v1361_v36 = vpop.eup %1360 }
  0xc0   : > { %v1730_v38 = vmul.f32 %v1361_v36, %v1361_v36  ;;  %v411_v52 = vmul.f32 0.15915494, %v1361_v36 }
  0xc1   : > { %v1732_v39 = vpop.permute.xlu1 %446 }
  0xc2   : > { %415 = vrot.lane.b32.xlu0 %v1730_v38, %s1522_s20  ;;  %v433_v34 = vmul.f32 %v1730_v38, %v1635_v2 }
  0xc5   : > { %v1363_v40 = vpop.eup %1362  ;;  %v545_v42 = vpop.permute.xlu1 %544 }
  0xc6   : > { %v550_v43 = vmul.f32 %v1644_v5, %v545_v42  ;;  %425 = vrot.lane.b32.xlu0 %v1730_v38, %s1523_s28  ;;  %v1739_v44 = vmul.f32 %v1363_v40, %v1363_v40  ;;  %v412_v57 = vmul.f32 0.15915494, %v1363_v40 }
  0xc8   : > { %v562_v45 = vsub.f32 %v550_v43, %v557_v37  ;;  %417 = vrot.lane.b32.xlu1 %v1739_v44, %s1522_s20  ;;  %v434_v37 = vmul.f32 %v1739_v44, %v1674_v15 }
  0xc9   : > { %v547_v46 = vpop.permute.xlu1 %546 }
  0xca   : > { %1364 = vrsqrt.f32 %v562_v45  ;;  %v551_v47 = vmul.f32 %v1651_v7, %v547_v46 }
  0xcc   : > { %v563_v49 = vsub.f32 %v551_v47, %v559_v41  ;;  %427 = vrot.lane.b32.xlu1 %v1739_v44, %s1523_s28 }
  0xcd   : > { %v699_v50 = vpop.permute.xlu1 %698 }
  0xce   : > { %1366 = vrsqrt.f32 %v563_v49  ;;  %v704_v51 = vmul.f32 %v1659_v10, %v699_v50 }
  0xd0   : > { %v716_v53 = vsub.f32 %v704_v51, %v711_v48  ;;  %511 = vperm.xlu1 %1348, %v411_v52  }
  0xd1   : > { %v701_v55 = vpop.permute.xlu1 %700 }
  0xd2   : > { %1368 = vrsqrt.f32 %v716_v53  ;;  %v705_v56 = vmul.f32 %v1667_v13, %v701_v55  ;;  %v424_v55 = vsub.f32 0.0, %v1674_v15 }
  0xd4   : > { %v1748_v58 = vpop.eup %1364  ;;  %v717_v59 = vsub.f32 %v705_v56, %v713_v54  ;;  %516 = vperm.xlu1 %1348, %v412_v57  }
  0xd5   : > { %v853_v60 = vpop.permute.xlu1 %852  ;;  %v566_v61 = vmul.f32 %v1748_v58, %v1748_v58 }
  0xd6   : > { %1370 = vrsqrt.f32 %v717_v59  ;;  %v858_v62 = vmul.f32 %v1677_v16, %v853_v60 }
  0xd7   : > { %572 = vrot.lane.b32.xlu0 %v566_v61, %s1522_s20  ;;  %v590_v36 = vmul.f32 %v1644_v5, %v566_v61 }
  0xd8   : > { %v1754_v3 = vpop.eup %1366  ;;  %v870_v6 = vsub.f32 %v858_v62, %v865_v63  ;;  %582 = vrot.lane.b32.xlu1 %v566_v61, %s1523_s28 }
  0xd9   : > { %v855_v9 = vpop.permute.xlu1 %854  ;;  %v567_v12 = vmul.f32 %v1754_v3, %v1754_v3  ;;  %1349 = vset.pattern.permute.xlu1 %v1519_v11 }
  0xda   : > { %1372 = vrsqrt.f32 %v870_v6  ;;  %v859_v17 = vmul.f32 %v1703_v19, %v855_v9 }
  0xdb   : > { %584 = vrot.lane.b32.xlu0 %v567_v12, %s1523_s28  ;;  %v591_v40 = vmul.f32 %v1651_v7, %v567_v12 }
  0xdc   : > { %v1761_v14 = vpop.eup %1368 }
  0xdd   : > { %v867_v18 = vpop.permute.xlu1 %866  ;;  %v720_v20 = vmul.f32 %v1761_v14, %v1761_v14 }
  0xde   : > { %v871_v26 = vsub.f32 %v859_v17, %v867_v18 }
  0xdf   : > { %574 = vrot.lane.b32.xlu0 %v567_v12, %s1522_s20  ;;  %736 = vrot.lane.b32.xlu1 %v720_v20, %s1523_s28  ;;  %v744_v38 = vmul.f32 %v1659_v10, %v720_v20 }
  0xe0   : > { %v1768_v27 = vpop.eup %1370  ;;  %1374 = vrsqrt.f32 %v871_v26 }
  0xe1   : > { %v721_v28 = vmul.f32 %v1768_v27, %v1768_v27  ;;  %v1820_v42 = vpop.permute.xlu1 %597 }
  0xe3   : > { %726 = vrot.lane.b32.xlu0 %v720_v20, %s1522_s20  ;;  %738 = vrot.lane.b32.xlu1 %v721_v28, %s1523_s28  ;;  %v745_v41 = vmul.f32 %v1667_v13, %v721_v28 }
  0xe4   : > { %v1774_v29 = vpop.eup %1372 }
  0xe5   : > { %v1778_v30 = vmul.f32 %v1774_v29, %v1774_v29 }
  0xe6   : > { %v1824_v44 = vpop.permute.xlu1 %603 }
  0xe7   : > { %728 = vrot.lane.b32.xlu0 %v721_v28, %s1522_s20  ;;  %890 = vrot.lane.b32.xlu1 %v1778_v30, %s1523_s28 }
  0xea   : > { %v1783_v31 = vpop.eup %1374 }
  0xeb   : > { %880 = vrot.lane.b32.xlu0 %v1778_v30, %s1522_s20  ;;  %v1789_v32 = vmul.f32 %v1783_v31, %v1783_v31  ;;  %v1830_v46 = vpop.permute.xlu1 %747 }
  0xed   : > { %892 = vrot.lane.b32.xlu1 %v1789_v32, %s1523_s28  ;;  %s1956_s28 = scalar_lea.vmem [#allocation6], %s1238_s18  ;;  %s1051_s18 = sshll.u32 %s1890_s16, 4  ;;  %s2025_s18 = int_to_ptr.vmem [resolvable:$true] %s1051_s18 }
  0xee   : > { %s1392_s0 = scalar_lea.vmem %s2025_s18, 256  ;;  %p1399_p0 = scmp.lt.s32.totalorder %s2025_s18, %s1397_s14 }
  0xef   : > { %607 = vperm.xlu0 %1347, %v1651_v7   ;;  %v1832_v48 = vpop.permute.xlu1 %751  ;;  %p1393_p11 = scmp.ne.s32.totalorder %s2025_s18, %s1392_s0 }
  0xf1   : > { %761 = vperm.xlu1 %1349, %v1667_v13   ;;  %p1394_p12 = pnand %p1393_p11, %p1605_p5 }
  0xf3   : > { %757 = vperm.xlu0 %1347, %v1659_v10   ;;  %p1395_p13 = pneg %p1394_p12 }
  0xf5   : > { %882 = vrot.lane.b32.xlu1 %v1789_v32, %s1522_s20 }
  0xf6   : > { %1350 = vset.pattern.permute.xlu1 %v1521_v21 }
  0xf7   : > { %911 = vperm.xlu0 %1347, %v1677_v16  }
  0xf9   : > { %489 = vperm.xlu1 %1350, %v433_v34  }
  0xfb   : > { %1353 = vset.pattern.permute.xlu0 %v1521_v21 }
  0xfc   : > { %318 = vperm.xlu0 %1353, %v1632_v1  }
  0xfd   : > { %646 = vperm.xlu1 %1350, %v590_v36  }
 0x100   : > { %323 = vperm.xlu0 %1353, %v1640_v4   ;;  %v1818_v4 = vpop.permute.xlu0 %593 }
 0x101   : > { %1351 = vset.pattern.permute.xlu1 %v1516_v0  ;;  %v1524_v0 = vmov 4  }
 0x102   : > { %905 = vperm.xlu1 %1351, %v1703_v19  }
 0x104   : > { %494 = vperm.xlu0 %1353, %v434_v37   ;;  %v1822_v43 = vpop.permute.xlu0 %901  ;;  %v735_v37 = vsub.f32 0.0, %v1667_v13 }
 0x106   : > { %1352 = vset.pattern.permute.xlu1 %v1521_v21 }
 0x107   : > { %800 = vperm.xlu1 %1352, %v744_v38  }
 0x108   : > { %651 = vperm.xlu0 %1353, %v591_v40   ;;  %v1826_v45 = vpop.permute.xlu0 %369 }
 0x10b   : > { %1355 = vset.pattern.permute.xlu1 %v1519_v11 }
 0x10c   : > { %805 = vperm.xlu0 %1353, %v745_v41   ;;  %915 = vperm.xlu1 %1355, %v1703_v19   ;;  %v1828_v11 = vpop.permute.xlu0 %450 }
 0x110   : > { %1354 = vset.pattern.permute.xlu0 %v1518_v8  ;;  %1356 = vset.pattern.permute.xlu1 %v1524_v0 }
 0x111   : > { %345 = vperm.xlu0 %1354, %v1632_v1   ;;  %v423_v1 = vsub.f32 0.0, %v1635_v2 }
 0x134   : > { %v416_v47 = vpop.permute.xlu0 %415 }
 0x135   : > { %v421_v49 = vmul.f32 %v416_v47, %v1635_v2 }
 0x137   : > { %457 = vperm.xlu1 %1356, %v421_v49   ;;  %v889_v49 = vsub.f32 0.0, %v1703_v19 }
 0x138   : > { %v426_v50 = vpop.permute.xlu0 %425 }
 0x139   : > { %v431_v51 = vmul.f32 %v426_v50, %v423_v1 }
 0x13a   : > { %v418_v52 = vpop.permute.xlu1 %417 }
 0x13b   : > { %v469_v53 = vmul.f32 2.0, %v431_v51  ;;  %v422_v54 = vmul.f32 %v418_v52, %v1674_v15  ;;  %v580_v15 = vsub.f32 0.0, %v1644_v5 }
 0x13d   : > { %473 = vperm.xlu0 %1354, %v469_v53   ;;  %462 = vperm.xlu1 %1356, %v422_v54   ;;  %v568_v53 = vmul.f32 0.15915494, %v1748_v58  ;;  %v581_v54 = vsub.f32 0.0, %v1651_v7  ;;  %v877_v58 = vmul.f32 0.15915494, %v1783_v31 }
 0x13e   : > { %v428_v56 = vpop.permute.xlu1 %427 }
 0x13f   : > { %v432_v57 = vmul.f32 %v428_v56, %v424_v55  ;;  %v723_v56 = vmul.f32 0.15915494, %v1768_v27  ;;  %v888_v27 = vsub.f32 0.0, %v1677_v16 }
 0x141   : > { %v470_v59 = vmul.f32 2.0, %v432_v57 }
 0x143   : > { %478 = vperm.xlu0 %1354, %v470_v59  }
 0x149   : > { %v573_v60 = vpop.permute.xlu0 %572 }
 0x14a   : > { %v578_v61 = vmul.f32 %v1644_v5, %v573_v60 }
 0x14c   : > { %614 = vperm.xlu1 %1356, %v578_v61   ;;  %v734_v61 = vsub.f32 0.0, %v1659_v10 }
 0x14d   : > { %v585_v2 = vpop.permute.xlu0 %584 }
 0x14e   : > { %v589_v60 = vmul.f32 %v585_v2, %v581_v54 }
 0x14f   : > { %v1839_v62 = vpop.permute.xlu1 %511 }
 0x151   : > { %v575_v63 = vpop.permute.xlu0 %574 }
 0x152   : > { %v579_v6 = vmul.f32 %v1651_v7, %v575_v63  ;;  %v627_v7 = vmul.f32 2.0, %v589_v60 }
 0x153   : > { %v1842_v9 = vpop.permute.xlu1 %516 }
 0x154   : > { %619 = vperm.xlu1 %1356, %v579_v6  }
 0x155   : > { %v727_v12 = vpop.permute.xlu0 %726 }
 0x156   : > { %v732_v17 = vmul.f32 %v1659_v10, %v727_v12  ;;  %v1246_v12 = vld [vmem:[%s2163_s2] ss:$0 sm:$0xff] }
 0x157   : > { %v583_v18 = vpop.permute.xlu1 %582  ;;  %v363_v31 = vmul.f32 %v1246_v12, %v1720_v24 }
 0x158   : > { %v588_v20 = vmul.f32 %v583_v18, %v580_v15  ;;  %768 = vperm.xlu1 %1356, %v732_v17  }
 0x159   : > { %v729_v26 = vpop.permute.xlu0 %728 }
 0x15a   : > { %v626_v28 = vmul.f32 2.0, %v588_v20  ;;  %v733_v34 = vmul.f32 %v1667_v13, %v729_v26  ;;  %v1247_v20 = vld [vmem:[%s2163_s2 + $0x1] ss:$0 sm:$0xff] }
 0x15b   : > { %v737_v36 = vpop.permute.xlu1 %736 }
 0x15c   : > { %773 = vperm.xlu1 %1356, %v733_v34   ;;  %630 = vperm.xlu0 %1354, %v626_v28   ;;  %v742_v15 = vmul.f32 %v737_v36, %v734_v61  ;;  %v373_v28 = vadd.f32 %v1826_v45, %v363_v31 }
 0x15d   : > { %v881_v38 = vpop.permute.xlu0 %880 }
 0x15e   : > { %v886_v40 = vmul.f32 %v1677_v16, %v881_v38  ;;  %v780_v2 = vmul.f32 2.0, %v742_v15 }
 0x15f   : > { %v739_v41 = vpop.permute.xlu1 %738 }
 0x160   : > { %v743_v5 = vmul.f32 %v739_v41, %v735_v37  ;;  %922 = vperm.xlu1 %1356, %v886_v40   ;;  %v359_v37 = vmul.f32 %v1247_v20, %v1720_v24 }
 0x162   : > { %v781_v0 = vmul.f32 2.0, %v743_v5 }
 0x163   : > { %v891_v47 = vpop.permute.xlu1 %890 }
 0x164   : > { %789 = vperm.xlu0 %1354, %v781_v0   ;;  %v896_v18 = vmul.f32 %v891_v47, %v888_v27  ;;  %v722_v27 = vmul.f32 0.15915494, %v1761_v14 }
 0x166   : > { %v934_v38 = vmul.f32 2.0, %v896_v18 }
 0x167   : > { %v893_v1 = vpop.permute.xlu1 %892 }
 0x168   : > { %v897_v50 = vmul.f32 %v893_v1, %v889_v49 }
 0x16a   : > { %v935_v51 = vmul.f32 2.0, %v897_v50  ;;  %v898_v50 = vmul.f32 %v1677_v16, %v1778_v30 }
 0x16c   : > { %943 = vperm.xlu0 %1354, %v935_v51  }
 0x16e   : > { %v608_v52 = vpop.permute.xlu0 %607 }
 0x170   : > { %1359 = vset.pattern.permute.xlu0 %v1521_v21  ;;  %v762_v13 = vpop.permute.xlu1 %761 }
 0x171   : > { %668 = vperm.xlu0 %1359, %v568_v53  }
 0x172   : > { %v1853_v55 = vpop.permute.xlu0 %757 }
 0x174   : > { %v883_v57 = vpop.permute.xlu1 %882 }
 0x175   : > { %v887_v59 = vmul.f32 %v1703_v19, %v883_v57  ;;  %827 = vperm.xlu0 %1359, %v723_v56   ;;  %v899_v56 = vmul.f32 %v1703_v19, %v1789_v32 }
 0x176   : > { %v1858_v63 = vpop.permute.xlu0 %911 }
 0x177   : > { %927 = vperm.xlu1 %1356, %v887_v59  }
 0x178   : > { %v1861_v6 = vpop.permute.xlu1 %489 }
 0x179   : > { %981 = vperm.xlu0 %1359, %v877_v58  }
 0x17b   : > { %v319_v17 = vpop.permute.xlu0 %318  ;;  %1357 = vset.pattern.permute.xlu1 %v1518_v8 }
 0x17c   : > { %635 = vperm.xlu1 %1357, %v627_v7   ;;  %v1871_v10 = vpop.permute.xlu1 %646  ;;  %v332_v16 = vmul.f32 %v1246_v12, %v319_v17  ;;  %v374_v58 = vmul.f32 %v1247_v20, %v319_v17 }
 0x17e   : > { %v342_v61 = vadd.f32 %v1716_v22, %v332_v16 }
 0x17f   : > { %v324_v26 = vpop.permute.xlu0 %323 }
 0x180   : > { %v333_v34 = vmul.f32 %v1246_v12, %v324_v26  ;;  %v375_v8 = vmul.f32 %v1247_v20, %v324_v26  ;;  %784 = vperm.xlu1 %1357, %v780_v2  }
 0x181   : > { %v906_v36 = vpop.permute.xlu1 %905 }
 0x182   : > { %v343_v40 = vadd.f32 %v1718_v23, %v333_v34  ;;  %v377_v41 = vadd.f32 %v375_v8, %v373_v28 }
 0x183   : > { %v495_v5 = vpop.permute.xlu0 %494 }
 0x184   : > { %v1881_v0 = vsub.f32 %v343_v40, %v359_v37  ;;  %v1884_v47 = vsub.f32 %v377_v41, %v1828_v11  ;;  %938 = vperm.xlu1 %1357, %v934_v38   ;;  %v1886_v49 = vsub.f32 %v377_v41, %v608_v52  ;;  %v1888_v45 = vsub.f32 %v377_v41, %v762_v13 }
 0x185   : > { %382 = vst.msk [vmem:[%s1890_s16 + $0x8] sm:$0xff] %vm378_vm0, %v377_v41 }
 0x186   : > { %v1895_v24 = vsub.f32 %v1881_v0, %v906_v36  ;;  %v498_v23 = vmul.f32 %v495_v5, %v1884_v47  ;;  %v801_v1 = vpop.permute.xlu1 %800  ;;  %380 = vst.msk [vmem:[%s1898_s17 + $0x8] sm:$0xff] %vm378_vm0, %v1881_v0  ;;  %v444_v8 = vsub.f32 %v1881_v0, %v1728_v35 }
 0x187   : > { %v652_v11 = vpop.permute.xlu0 %651 }
 0x188   : > { %v500_v51 = vmul.f32 %v498_v23, %v1884_v47  ;;  %v655_v52 = vmul.f32 %v652_v11, %v1886_v49  ;;  %1358 = vset.pattern.permute.xlu1 %v1521_v21  ;;  %v569_v21 = vmul.f32 0.15915494, %v1754_v3  ;;  %v876_v3 = vmul.f32 0.15915494, %v1774_v29 }
 0x189   : > { %954 = vperm.xlu1 %1358, %v898_v50  }
 0x18a   : > { %v1909_v53 = vmul.f32 %v655_v52, %v1886_v49 }
 0x18b   : > { %v806_v13 = vpop.permute.xlu0 %805  ;;  %v916_v54 = vpop.permute.xlu1 %915 }
 0x18c   : > { %v809_v57 = vmul.f32 %v806_v13, %v1888_v45  ;;  %v1914_v59 = vsub.f32 %v377_v41, %v916_v54 }
 0x18d   : > { %959 = vperm.xlu1 %1358, %v899_v56   ;;  %v1952_v56 = vld [vmem:[%s2163_s2 + $0x2] ss:$0 sm:$0xff] }
 0x18e   : > { %v1917_v30 = vmul.f32 %v809_v57, %v1888_v45 }
 0x190   : > { %v346_v60 = vpop.permute.xlu0 %345 }
 0x191   : > { %v358_v7 = vmul.f32 %v1247_v20, %v346_v60  ;;  %v362_v15 = vmul.f32 %v1246_v12, %v346_v60  ;;  %673 = vperm.xlu1 %1358, %v569_v21  }
 0x193   : > { %v1921_v19 = vsub.f32 %v342_v61, %v358_v7  ;;  %v372_v32 = vadd.f32 %v1722_v25, %v362_v15 }
 0x195   : > { %v376_v31 = vadd.f32 %v374_v58, %v372_v32  ;;  %822 = vperm.xlu1 %1358, %v722_v27   ;;  %379 = vst.msk [vmem:[%s1898_s17] sm:$0xff] %vm378_vm0, %v1921_v19  ;;  %v443_v17 = vsub.f32 %v1921_v19, %v1726_v33 }
 0x197   : > { %v1930_v2 = vsub.f32 %v376_v31, %v1853_v55  ;;  %v1933_v22 = vsub.f32 %v376_v31, %v1858_v63  ;;  %381 = vst.msk [vmem:[%s1890_s16] sm:$0xff] %vm378_vm0, %v376_v31  ;;  %v453_v29 = vsub.f32 %v376_v31, %v1732_v39  ;;  %v610_v21 = vsub.f32 %v376_v31, %v1824_v44  ;;  %s1398_s16 = scalar_lea.vmem %s1397_s14, 512 }
 0x198   : > { %p1400_p1 = scmp.lt.s32.totalorder %s1398_s16, %s1392_s0 }
 0x199   : > { %976 = vperm.xlu1 %1358, %v876_v3   ;;  %v808_v25 = vmul.f32 %v801_v1, %v1930_v2  ;;  %v497_v63 = vmul.f32 %v1861_v6, %v453_v29  ;;  %v654_v32 = vmul.f32 %v1871_v10, %v610_v21 }
 0x19a   : > { %p1401_p2 = por %p1400_p1, %p1399_p0 }
 0x19b   : > { %v1939_v14 = vmul.f32 %v808_v25, %v1930_v2  ;;  %v499_v37 = vmul.f32 %v497_v63, %v453_v29  ;;  %v656_v31 = vmul.f32 %v654_v32, %v610_v21 }
 0x19c   : > { %p1402_p3 = pnand %p1401_p2, %p1395_p13 }
 0x1b6   : > { %v458_v12 = vpop.permute.xlu1 %457 }
 0x1b7   : > { %v465_v18 = vmul.f32 %v458_v12, %v443_v17 }
 0x1b9   : > { %v467_v28 = vmul.f32 %v465_v18, %v443_v17 }
 0x1bc   : > { %v474_v55 = vpop.permute.xlu0 %473  ;;  %v463_v26 = vpop.permute.xlu1 %462 }
 0x1bd   : > { %v481_v20 = vmul.f32 %v474_v55, %v443_v17  ;;  %v466_v38 = vmul.f32 %v463_v26, %v444_v8  ;;  %v755_v17 = vsub.f32 %v1881_v0, %v1832_v48 }
 0x1bf   : > { %v483_v34 = vmul.f32 %v481_v20, %v453_v29  ;;  %v468_v39 = vmul.f32 %v466_v38, %v444_v8 }
 0x1c1   : > { %v485_v36 = vadd.f32 %v483_v34, %v467_v28 }
 0x1c2   : > { %v479_v40 = vpop.permute.xlu0 %478 }
 0x1c3   : > { %v501_v41 = vadd.f32 %v499_v37, %v485_v36  ;;  %v482_v33 = vmul.f32 %v479_v40, %v444_v8 }
 0x1c5   : > { %v503_v5 = vmul.f32 -0.5, %v501_v41  ;;  %v484_v23 = vmul.f32 %v482_v33, %v1884_v47 }
 0x1c7   : > { %v505_v1 = vmul.f32 1.442695, %v503_v5  ;;  %v486_v11 = vadd.f32 %v484_v23, %v468_v39 }
 0x1c9   : > { %1376 = vpow2.f32 %v505_v1  ;;  %v502_v6 = vadd.f32 %v500_v51, %v486_v11  ;;  %v600_v51 = vsub.f32 %v1921_v19, %v1818_v4  ;;  %v601_v1 = vsub.f32 %v1881_v0, %v1820_v42 }
 0x1cb   : > { %v504_v50 = vmul.f32 -0.5, %v502_v6  ;;  %v615_v13 = vpop.permute.xlu1 %614 }
 0x1cc   : > { %v622_v58 = vmul.f32 %v615_v13, %v600_v51 }
 0x1cd   : > { %v507_v52 = vmul.f32 1.442695, %v504_v50 }
 0x1ce   : > { %v624_v3 = vmul.f32 %v622_v58, %v600_v51 }
 0x1cf   : > { %1378 = vpow2.f32 %v507_v52 }
 0x1d3   : > { %v1377_v35 = vpop.eup %1376  ;;  %v620_v54 = vpop.permute.xlu1 %619 }
 0x1d4   : > { %v519_v57 = vmul.f32 %v1377_v35, %v1839_v62  ;;  %v623_v50 = vmul.f32 %v620_v54, %v601_v1  ;;  %v908_v54 = vsub.f32 %v1921_v19, %v1822_v43 }
 0x1d6   : > { %v529_v47 = vmul.f32 %v1952_v56, %v519_v57  ;;  %521 = vst.msk [vmem:[%s1956_s28] sm:$0xff] %vm378_vm0, %v519_v57 }
 0x1d7   : > { %v769_v61 = vpop.permute.xlu1 %768 }
 0x1d8   : > { %v531_v16 = vsel %vm378_vm0, %v529_v47, 0.0  ;;  %v754_v47 = vsub.f32 %v1921_v19, %v1830_v46 }
 0x1d9   : > { %v1379_v60 = vpop.eup %1378  ;;  %532 = vadd.xlane.f32.xlu0 %v531_v16 }
 0x1da   : > { %v520_v62 = vmul.f32 %v1379_v60, %v1842_v9  ;;  %v776_v60 = vmul.f32 %v769_v61, %v754_v47 }
 0x1db   : > { %v631_v7 = vpop.permute.xlu0 %630  ;;  %v774_v12 = vpop.permute.xlu1 %773 }
 0x1dc   : > { %v638_v15 = vmul.f32 %v631_v7, %v600_v51  ;;  %v530_v27 = vmul.f32 %v1952_v56, %v520_v62  ;;  %522 = vst.msk [vmem:[%s1956_s28 + $0x20] sm:$0xff] %vm378_vm0, %v520_v62  ;;  %v777_v29 = vmul.f32 %v774_v12, %v755_v17  ;;  %v778_v7 = vmul.f32 %v776_v60, %v754_v47 }
 0x1de   : > { %v640_v4 = vmul.f32 %v638_v15, %v610_v21  ;;  %v534_v25 = vsel %vm378_vm0, %v530_v27, 0.0  ;;  %v779_v63 = vmul.f32 %v777_v29, %v755_v17  ;;  %v625_v21 = vmul.f32 %v623_v50, %v601_v1 }
 0x1df   : > { %535 = vadd.xlane.f32.xlu1 %v534_v25  ;;  %v923_v41 = vpop.permute.xlu1 %922 }
 0x1e0   : > { %v642_v44 = vadd.f32 %v640_v4, %v624_v3  ;;  %v930_v46 = vmul.f32 %v923_v41, %v908_v54 }
 0x1e2   : > { %v658_v9 = vadd.f32 %v656_v31, %v642_v44 }
 0x1e3   : > { %v790_v18 = vpop.permute.xlu0 %789 }
 0x1e4   : > { %v660_v55 = vmul.f32 -0.5, %v658_v9  ;;  %v793_v10 = vmul.f32 %v790_v18, %v755_v17 }
 0x1e6   : > { %v662_v20 = vmul.f32 1.442695, %v660_v55  ;;  %v795_v26 = vmul.f32 %v793_v10, %v1888_v45 }
 0x1e8   : > { %1380 = vpow2.f32 %v662_v20  ;;  %v797_v28 = vadd.f32 %v795_v26, %v779_v63 }
 0x1ea   : > { %v813_v34 = vadd.f32 %v1917_v30, %v797_v28 }
 0x1eb   : > { %v944_v8 = vpop.permute.xlu0 %943 }
 0x1ec   : > { %v815_v36 = vmul.f32 -0.5, %v813_v34  ;;  %v947_v37 = vmul.f32 %v944_v8, %v1895_v24 }
 0x1ee   : > { %v818_v38 = vmul.f32 1.442695, %v815_v36  ;;  %v949_v48 = vmul.f32 %v947_v37, %v1914_v59 }
 0x1f0   : > { %1382 = vpow2.f32 %v818_v38  ;;  %v669_v33 = vpop.permute.xlu0 %668 }
 0x1f2   : > { %v1381_v40 = vpop.eup %1380 }
 0x1f3   : > { %v676_v5 = vmul.f32 %v1381_v40, %v669_v33 }
 0x1f4   : > { %v828_v52 = vpop.permute.xlu0 %827 }
 0x1f5   : > { %1251 = vst.msk [vmem:[%s1956_s28 + $0x8] sm:$0xff] %vm378_vm0, %v676_v5  ;;  %v681_v45 = vmul.f32 %v1952_v56, %v676_v5 }
 0x1f6   : > { %v928_v39 = vpop.permute.xlu1 %927 }
 0x1f7   : > { %v931_v30 = vmul.f32 %v928_v39, %v1895_v24  ;;  %v683_v23 = vsel %vm378_vm0, %v681_v45, 0.0 }
 0x1f8   : > { %684 = vadd.xlane.f32.xlu1 %v683_v23 }
 0x1f9   : > { %v933_v11 = vmul.f32 %v931_v30, %v1895_v24  ;;  %v982_v30 = vpop.permute.xlu0 %981 }
 0x1fa   : > { %v1383_v6 = vpop.eup %1382 }
 0x1fb   : > { %v831_v13 = vmul.f32 %v1383_v6, %v828_v52  ;;  %v951_v35 = vadd.f32 %v949_v48, %v933_v11  ;;  %v636_v57 = vpop.permute.xlu1 %635 }
 0x1fc   : > { %v639_v51 = vmul.f32 %v636_v57, %v601_v1 }
 0x1fd   : > { %1256 = vst.msk [vmem:[%s1956_s28 + $0x30] sm:$0xff] %vm378_vm0, %v831_v13  ;;  %v836_v16 = vmul.f32 %v1952_v56, %v831_v13 }
 0x1fe   : > { %v641_v42 = vmul.f32 %v639_v51, %v1886_v49  ;;  %v932_v49 = vmul.f32 %v930_v46, %v908_v54 }
 0x1ff   : > { %v785_v0 = vpop.permute.xlu1 %784  ;;  %v840_v24 = vsel %vm378_vm0, %v836_v16, 0.0 }
 0x200   : > { %v643_v58 = vadd.f32 %v641_v42, %v625_v21  ;;  %v792_v62 = vmul.f32 %v785_v0, %v754_v47  ;;  %841 = vadd.xlane.f32.xlu1 %v840_v24 }
 0x202   : > { %v659_v15 = vadd.f32 %v1909_v53, %v643_v58  ;;  %v794_v32 = vmul.f32 %v792_v62, %v1930_v2 }
 0x203   : > { %v939_v27 = vpop.permute.xlu1 %938 }
 0x204   : > { %v661_v3 = vmul.f32 -0.5, %v659_v15  ;;  %v796_v61 = vadd.f32 %v794_v32, %v778_v7  ;;  %v946_v4 = vmul.f32 %v939_v27, %v908_v54 }
 0x206   : > { %v664_v25 = vmul.f32 1.442695, %v661_v3  ;;  %v812_v12 = vadd.f32 %v1939_v14, %v796_v61  ;;  %v948_v44 = vmul.f32 %v946_v4, %v1933_v22 }
 0x208   : > { %1384 = vpow2.f32 %v664_v25  ;;  %v814_v43 = vmul.f32 -0.5, %v812_v12  ;;  %v950_v19 = vadd.f32 %v948_v44, %v932_v49  ;;  %v955_v31 = vpop.permute.xlu1 %954 }
 0x209   : > { %v962_v17 = vmul.f32 %v955_v31, %v1933_v22 }
 0x20a   : > { %v816_v9 = vmul.f32 1.442695, %v814_v43 }
 0x20b   : > { %v964_v53 = vmul.f32 %v962_v17, %v1933_v22 }
 0x20c   : > { %1386 = vpow2.f32 %v816_v9  ;;  %v960_v2 = vpop.permute.xlu1 %959 }
 0x20d   : > { %v966_v29 = vadd.f32 %v964_v53, %v950_v19  ;;  %v963_v18 = vmul.f32 %v960_v2, %v1914_v59 }
 0x20f   : > { %v968_v55 = vmul.f32 -0.5, %v966_v29  ;;  %v965_v14 = vmul.f32 %v963_v18, %v1914_v59 }
 0x210   : > { %v674_v10 = vpop.permute.xlu1 %673 }
 0x211   : > { %v970_v20 = vmul.f32 1.442695, %v968_v55  ;;  %v967_v63 = vadd.f32 %v965_v14, %v951_v35 }
 0x212   : > { %v1385_v26 = vpop.eup %1384 }
 0x213   : > { %1388 = vpow2.f32 %v970_v20  ;;  %v969_v28 = vmul.f32 -0.5, %v967_v63  ;;  %v677_v34 = vmul.f32 %v1385_v26, %v674_v10 }
 0x214   : > { %v823_v37 = vpop.permute.xlu1 %822 }
 0x215   : > { %v972_v8 = vmul.f32 1.442695, %v969_v28  ;;  %1252 = vst.msk [vmem:[%s1956_s28 + $0x28] sm:$0xff] %vm378_vm0, %v677_v34  ;;  %v682_v22 = vmul.f32 %v1952_v56, %v677_v34 }
 0x216   : > { %v1387_v36 = vpop.eup %1386 }
 0x217   : > { %1390 = vpow2.f32 %v972_v8  ;;  %v830_v38 = vmul.f32 %v1387_v36, %v823_v37  ;;  %v686_v59 = vsel %vm378_vm0, %v682_v22, 0.0 }
 0x218   : > { %687 = vadd.xlane.f32.xlu0 %v686_v59  ;;  %v977_v33 = vpop.permute.xlu1 %976 }
 0x219   : > { %1255 = vst.msk [vmem:[%s1956_s28 + $0x10] sm:$0xff] %vm378_vm0, %v830_v38  ;;  %v835_v48 = vmul.f32 %v1952_v56, %v830_v38 }
 0x21b   : > { %v837_v40 = vsel %vm378_vm0, %v835_v48, 0.0 }
 0x21c   : > { %838 = vadd.xlane.f32.xlu0 %v837_v40 }
 0x21d   : > { %v1389_v41 = vpop.eup %1388 }
 0x21e   : > { %v984_v5 = vmul.f32 %v1389_v41, %v977_v33 }
 0x220   : > { %1259 = vst.msk [vmem:[%s1956_s28 + $0x18] sm:$0xff] %vm378_vm0, %v984_v5  ;;  %v989_v45 = vmul.f32 %v1952_v56, %v984_v5 }
 0x221   : > { %v1391_v39 = vpop.eup %1390 }
 0x222   : > { %v991_v23 = vsel %vm378_vm0, %v989_v45, 0.0  ;;  %v985_v1 = vmul.f32 %v1391_v39, %v982_v30 }
 0x223   : > { %992 = vadd.xlane.f32.xlu0 %v991_v23 }
 0x224   : > { %v990_v11 = vmul.f32 %v1952_v56, %v985_v1  ;;  %1260 = vst.msk [vmem:[%s1956_s28 + $0x38] sm:$0xff] %vm378_vm0, %v985_v1 }
 0x226   : > { %v994_v6 = vsel %vm378_vm0, %v990_v11, 0.0 }
 0x227   : > { %995 = vadd.xlane.f32.xlu1 %v994_v6 }
 0x228   : > { %1405 = shalt.err (!%p1402_p3)
}
 0x229   : > { %s1406_s29 = scalar_lea.hbm %s2022_s15, 256  ;;  %s1410_s20 = scalar_lea.hbm %s2151_s4, 768 }
 0x22a   : > { %p1407_p4 = scmp.ne.s32.totalorder %s2022_s15, %s1406_s29  ;;  %p1411_p9 = scmp.lt.u32.totalorder %s2022_s15, %s2151_s4 }
 0x22b   : > { %p1412_p10 = scmp.lt.u32.totalorder %s1410_s20, %s1406_s29  ;;  %p1414_p12 = scmp.lt.u32.totalorder %s1406_s29, %s2022_s15 }
 0x22c   : > { %p1408_p7 = pnand %p1407_p4, %p1605_p5 }
 0x22d   : > { %p1413_p11 = por %p1412_p10, %p1411_p9 }
 0x22e   : > { %p1409_p8 = pneg %p1408_p7 }
 0x22f   : > { %p1415_p13 = por %p1414_p12, %p1413_p11 }
 0x231   : > { %p1416_p0 = pnand %p1415_p13, %p1409_p8 }
 0x233   : > { %1419 = shalt.err (!%p1416_p0)
}
 0x234   : > { %s1526_s0 = smov 128   ;;  %s1527_s16 = smov 8  }
 0x235   : > { %1279 = dma.vmem_to_hbm [thread:$0]  (%p1605_p5), %s2025_s18, 256, %s2022_s15, %s2032_s10, %s1526_s0, %s1526_s0, %s1527_s16  }
 0x236   : > { %s1035_s11 = sshll.u32 %s1898_s17, 4  ;;  %s1277_s29 = sshll.u32 %s1586_s25, 10  ;;  %s2061_s11 = int_to_ptr.vmem [resolvable:$true] %s1035_s11 }
 0x237   : > { %s2066_s13 = scalar_lea.hbm %s2152_s5, %s1277_s29  ;;  %s1007_s14 = scalar_lea.sflag [#allocation3], %s1869_s12 }
 0x238   : > { %s1420_s1 = scalar_lea.vmem %s2061_s11, 256  ;;  %s1528_s2 = smov [#allocation2]  }
 0x239   : > { %p1421_p1 = scmp.ne.s32.totalorder %s2061_s11, %s1420_s1  ;;  %s1424_s15 = sshll.u32 %s1528_s2, 4  ;;  %s1425_s15 = int_to_ptr.vmem [resolvable:$false] %s1424_s15 }
 0x23a   : > { %s1426_s25 = scalar_lea.vmem %s1425_s15, 512  ;;  %p1427_p4 = scmp.lt.s32.totalorder %s2061_s11, %s1425_s15 }
 0x23b   : > { %p1422_p2 = pnand %p1421_p1, %p1605_p5  ;;  %p1428_p7 = scmp.lt.s32.totalorder %s1426_s25, %s1420_s1 }
 0x23d   : > { %p1423_p3 = pneg %p1422_p2  ;;  %p1429_p8 = por %p1428_p7, %p1427_p4 }
 0x23f   : > { %p1430_p9 = pnand %p1429_p8, %p1423_p3 }
 0x241   : > { %1433 = shalt.err (!%p1430_p9)
}
 0x242   : > { %s1434_s17 = scalar_lea.hbm %s2030_s26, 256  ;;  %s1438_s2 = scalar_lea.hbm %s2150_s3, 768 }
 0x243   : > { %p1435_p10 = scmp.ne.s32.totalorder %s2030_s26, %s1434_s17  ;;  %p1439_p13 = scmp.lt.u32.totalorder %s2030_s26, %s2150_s3 }
 0x244   : > { %p1440_p0 = scmp.lt.u32.totalorder %s1438_s2, %s1434_s17  ;;  %p1442_p2 = scmp.lt.u32.totalorder %s1434_s17, %s2030_s26 }
 0x245   : > { %p1436_p11 = pnand %p1435_p10, %p1605_p5 }
 0x246   : > { %p1441_p1 = por %p1440_p0, %p1439_p13 }
 0x247   : > { %p1437_p12 = pneg %p1436_p11 }
 0x248   : > { %p1443_p3 = por %p1442_p2, %p1441_p1 }
 0x24a   : > { %p1444_p4 = pnand %p1443_p3, %p1437_p12 }
 0x24c   : > { %1447 = shalt.err (!%p1444_p4)
}
 0x24d   : > { %1278 = dma.vmem_to_hbm [thread:$0]  (%p1605_p5), %s2061_s11, 256, %s2030_s26, %s1007_s14, %s1526_s0, %s1526_s0, %s1527_s16  }
 0x24e   : > { %s1068_s1 = sshll.u32 %s1956_s28, 4  ;;  %s1529_s25 = smov [#allocation6]   ;;  %s2096_s1 = int_to_ptr.vmem [resolvable:$true] %s1068_s1 }
 0x24f   : > { %s1448_s15 = scalar_lea.vmem %s2096_s1, 1024  ;;  %s1452_s17 = sshll.u32 %s1529_s25, 4  ;;  %s1453_s17 = int_to_ptr.vmem [resolvable:$false] %s1452_s17 }
 0x250   : > { %p1449_p7 = scmp.ne.s32.totalorder %s2096_s1, %s1448_s15  ;;  %s1454_s12 = scalar_lea.vmem %s1453_s17, 2048 }
 0x251   : > { %p1455_p10 = scmp.lt.s32.totalorder %s2096_s1, %s1453_s17  ;;  %p1456_p11 = scmp.lt.s32.totalorder %s1454_s12, %s1448_s15 }
 0x252   : > { %p1450_p8 = pnand %p1449_p7, %p1605_p5 }
 0x253   : > { %p1457_p12 = por %p1456_p11, %p1455_p10 }
 0x254   : > { %p1451_p9 = pneg %p1450_p8 }
 0x256   : > { %p1458_p13 = pnand %p1457_p12, %p1451_p9 }
 0x258   : > { %1461 = shalt.err (!%p1458_p13)
}
 0x259   : > { %s1462_s26 = scalar_lea.hbm %s2066_s13, 1024  ;;  %s1466_s14 = scalar_lea.hbm %s2152_s5, 3072 }
 0x25a   : > { %p1463_p0 = scmp.ne.s32.totalorder %s2066_s13, %s1462_s26  ;;  %p1467_p3 = scmp.lt.u32.totalorder %s2066_s13, %s2152_s5 }
 0x25b   : > { %p1468_p4 = scmp.lt.u32.totalorder %s1466_s14, %s1462_s26  ;;  %p1470_p8 = scmp.lt.u32.totalorder %s1462_s26, %s2066_s13 }
 0x25c   : > { %p1464_p1 = pnand %p1463_p0, %p1605_p5 }
 0x25d   : > { %p1469_p7 = por %p1468_p4, %p1467_p3 }
 0x25e   : > { %p1465_p2 = pneg %p1464_p1 }
 0x25f   : > { %p1471_p9 = por %p1470_p8, %p1469_p7 }
 0x261   : > { %p1472_p10 = pnand %p1471_p9, %p1465_p2 }
 0x263   : > { %1475 = shalt.err (!%p1472_p10)
}
 0x264   : > { %1280 = dma.vmem_to_hbm [thread:$0]  (%p1605_p5), %s2096_s1, 1024, %s2066_s13, %s2032_s10, %s1526_s0, %s1526_s0, %s1527_s16   ;;  %vm1003_vm1 = vcmask 7168  }
 0x265   : > { %s2164_s7 = sshll.u32 %s2171_s9, 3 }
 0x266   : > { %v533_v56 = vpop.xlane.xlu0 %532  ;;  %s309_s16 = scalar_lea.vmem %s2153_s6, %s2164_s7 }
 0x267   : > { %v537_v47 = vsub.f32 1.0, %v533_v56 }
 0x26c   : > { %v536_v50 = vpop.xlane.xlu1 %535 }
 0x26d   : > { %v538_v21 = vsub.f32 1.0, %v536_v50 }
 0x285   : > { %v685_v13 = vpop.xlane.xlu1 %684 }
 0x286   : > { %v689_v57 = vsub.f32 1.0, %v685_v13 }
 0x288   : > { %v691_v60 = vmul.f32 %v689_v57, %v537_v47 }
 0x28d   : > { %v842_v42 = vpop.xlane.xlu1 %841 }
 0x28e   : > { %v844_v62 = vsub.f32 1.0, %v842_v42 }
 0x2a5   : > { %v688_v52 = vpop.xlane.xlu0 %687 }
 0x2a6   : > { %v690_v51 = vsub.f32 1.0, %v688_v52 }
 0x2a8   : > { %v692_v24 = vmul.f32 %v690_v51, %v538_v21 }
 0x2a9   : > { %v839_v35 = vpop.xlane.xlu0 %838 }
 0x2aa   : > { %v843_v16 = vsub.f32 1.0, %v839_v35  ;;  %v846_v32 = vmul.f32 %v844_v62, %v692_v24 }
 0x2ac   : > { %v845_v54 = vmul.f32 %v843_v16, %v691_v60 }
 0x2b0   : > { %v993_v0 = vpop.xlane.xlu0 %992 }
 0x2b1   : > { %v997_v58 = vsub.f32 1.0, %v993_v0 }
 0x2b3   : > { %v999_v7 = vmul.f32 %v997_v58, %v845_v54 }
 0x2b4   : > { %v996_v46 = vpop.xlane.xlu1 %995 }
 0x2b5   : > { %v1001_v15 = vsub.f32 1.0, %v999_v7  ;;  %v998_v27 = vsub.f32 1.0, %v996_v46 }
 0x2b7   : > { %1004 = vst.msk [vmem:[%s309_s16] sm:$0xff] %vm1003_vm1, %v1001_v15  ;;  %v1000_v3 = vmul.f32 %v998_v27, %v846_v32 }
 0x2b9   : > { %v1002_v61 = vsub.f32 1.0, %v1000_v3 }
 0x2bb   : > { %1005 = vst.msk [vmem:[%s309_s16 + $0x8] sm:$0xff] %vm1003_vm1, %v1002_v61 }
 0x2bc PF: > { %p1294_p5 = scmp.ge.s32.totalorder %s1514_s24, 2  ;;  %s1087_s13 = sand.u32 1, %s1502_s21  }
 0x2bd   : > { %s1088_s9 = scalar_lea.sflag [#allocation3], %s1087_s13 }
 0x2be   : > { %p1285_p11 = pnand %p1294_p5, %p1609_p6 }
 0x2c0   : > { %1493 = dma.done.wait (!%p1285_p11), %s1088_s9, 256  }
 0x2c1   : > { %1495 = vsyncadd (!%p1285_p11), %s1088_s9, 4294967040  ;;  %s2165_s2 = sadd.s32 4294967294, %s1514_s24  }
 0x2c2   : > { %s1096_s19 = sand.u32 1, %s2165_s2  }
 0x2c3   : > { %s1097_s20 = scalar_lea.sflag [#allocation5], %s1096_s19 }
 0x2c4   : > { %1497 = dma.done.wait (!%p1285_p11), %s1097_s20, 1280  }
 0x2c5   : > { %1499 = vsyncadd (!%p1285_p11), %s1097_s20, 4294966016  ;;  %p20_p12 = scmp.ge.s32.totalorder %s1590_s27, 5   ;;  %s2166_s21 = smov %s1506_s22 }
 0x2c6   : > { %s2167_s22 = smov %s1510_s23  ;;  %s2168_s23 = smov %s1603_s30 }
 0x2c7   : > { %s2169_s24 = smov %s1590_s27  ;;  %22 = sbr.rel (!%p20_p12) target bundleno = 9 (0x9), region = 120 }
 0x2ce   :  { %1119 = vsyncpa [#allocation3], 1 }
 0x2cf   :  { %1121 = vsyncpa [#allocation3 + $0x1], 1 }
 0x2d0   :  { %1122 = vsyncpa [#allocation5], 1 }
 0x2d1   :  { %1124 = vsyncpa [#allocation5 + $0x1], 1 }

</bundles_post_ra>
